<compile_context>
chip_gen: v7x
topology: tpu7x:2x2x1
jax: 0.10.0
libtpu: 0.0.40
codegen_flags: <defaults>
</compile_context>

<pallas_src>
import math
from functools import partial

import jax
import jax.numpy as jnp
from jax.experimental import pallas as pl
from jax.experimental.pallas import tpu as pltpu


# ---------------------------------------------------------------------------
# Tile selection helpers
# ---------------------------------------------------------------------------
def _round_up(x, m):
    return (x + m - 1) // m * m


_PREF_TILE_CACHE = None


def _preferred_tile():
    """256-wide N tiles for the 256x256 MXUs (v6e/v7x); 128 for v5e."""
    global _PREF_TILE_CACHE
    if _PREF_TILE_CACHE is None:
        try:
            kind = jax.devices()[0].device_kind.lower()
        except Exception:
            kind = ""
        _PREF_TILE_CACHE = 128 if ("v5 lite" in kind or "v5e" in kind) else 256
    return _PREF_TILE_CACHE


def _pick_tile(dim_padded, pref, min_for_256):
    if pref >= 256 and dim_padded % 256 == 0 and dim_padded >= min_for_256:
        return 256
    return 128


def _pick_tm(Mp, m_group=None):
    """Largest M tile (<=512) that divides Mp, leaves >=2 grid blocks (so both
    v7x TensorCores get work) and, when instance-norm stats are fused, also
    divides the per-image row count so blocks never straddle images."""
    for cand in (512, 256, 128):
        if Mp % cand == 0 and Mp // cand >= 2 and (m_group is None or m_group % cand == 0):
            return cand
    return 128


# ---------------------------------------------------------------------------
# Pallas fused matmul kernels:  act( A @ B + bias )   (single full-K block)
# ---------------------------------------------------------------------------
_ACTS = {
    "none": lambda x: x,
    "relu": jax.nn.relu,
    "sigmoid": jax.nn.sigmoid,
    "tanh": jnp.tanh,
}


def _fused_matmul_kernel(a_ref, b_ref, bias_ref, o_ref, *, act):
    acc = jnp.dot(a_ref[...], b_ref[...], preferred_element_type=jnp.float32)
    acc = acc + bias_ref[...]                       # (1, tn) broadcasts over rows
    o_ref[...] = _ACTS[act](acc).astype(o_ref.dtype)


def _fused_matmul_stats_kernel(a_ref, b_ref, bias_ref, o_ref, sum_ref, sq_ref, *, act):
    acc = jnp.dot(a_ref[...], b_ref[...], preferred_element_type=jnp.float32)
    val = acc + bias_ref[...]
    o_ref[...] = _ACTS[act](val).astype(o_ref.dtype)
    # per-(i,j)-block channel statistics of the pre-activation value (f32)
    sum_ref[...] = jnp.sum(val, axis=0, keepdims=True)
    sq_ref[...] = jnp.sum(val * val, axis=0, keepdims=True)


def _fused_matmul_bias_act(a, b, bias, act, out_dtype=jnp.bfloat16,
                           return_stats=False, m_group=None):
    """(M, K) @ (K, N) + bias, activation fused.  bf16 operands, f32 accum.

    K is a single full block (every RAFT-small conv has K <= ~2.2k), so there
    is no reduction grid axis and no accumulator scratch.  When return_stats
    is set, per-i-block channel sum / sum-of-squares are emitted as extra
    outputs so instance norm needs no separate reduction pass.
    """
    M, K = a.shape
    K2, N = b.shape
    assert K == K2
    pref = _preferred_tile()
    Mp, Np = _round_up(M, 128), _round_up(N, 128)
    tm = _pick_tm(Mp, m_group if return_stats else None)
    tn = _pick_tile(Np, pref, 256)
    if return_stats:
        assert m_group is not None and Mp == M and m_group % tm == 0

    a_p = a if a.dtype == jnp.bfloat16 else a.astype(jnp.bfloat16)
    if Mp != M:                       # never triggered for the shapes used here
        a_p = jnp.pad(a_p, ((0, Mp - M), (0, 0)))
    b_p = b.astype(jnp.bfloat16)
    bias_p = bias.astype(jnp.float32)
    if Np != N:                       # only the tiny weight / bias get padded
        b_p = jnp.pad(b_p, ((0, 0), (0, Np - N)))
        bias_p = jnp.pad(bias_p, ((0, Np - N),))
    bias_p = bias_p.reshape(1, Np)

    grid = (Mp // tm, Np // tn)
    in_specs = [pl.BlockSpec((tm, K), lambda i, j: (i, 0)),
                pl.BlockSpec((K, tn), lambda i, j: (0, j)),
                pl.BlockSpec((1, tn), lambda i, j: (0, j))]

    if return_stats:
        out_shape = (jax.ShapeDtypeStruct((Mp, Np), out_dtype),
                     jax.ShapeDtypeStruct((grid[0], 1, Np), jnp.float32),
                     jax.ShapeDtypeStruct((grid[0], 1, Np), jnp.float32))
        out_specs = (pl.BlockSpec((tm, tn), lambda i, j: (i, j)),
                     pl.BlockSpec((None, 1, tn), lambda i, j: (i, 0, j)),
                     pl.BlockSpec((None, 1, tn), lambda i, j: (i, 0, j)))
        kern = partial(_fused_matmul_stats_kernel, act=act)
    else:
        out_shape = jax.ShapeDtypeStruct((Mp, Np), out_dtype)
        out_specs = pl.BlockSpec((tm, tn), lambda i, j: (i, j))
        kern = partial(_fused_matmul_kernel, act=act)

    res = pl.pallas_call(
        kern,
        out_shape=out_shape,
        grid_spec=pltpu.PrefetchScalarGridSpec(
            num_scalar_prefetch=0, grid=grid,
            in_specs=in_specs, out_specs=out_specs),
        compiler_params=pltpu.CompilerParams(
            dimension_semantics=("parallel", "parallel")),
    )(a_p, b_p, bias_p)

    if return_stats:
        out, s, sq = res
        if Mp != M or Np != N:
            out = out[:M, :N]
        s = s[:, 0, :N]
        sq = sq[:, 0, :N]
        return out, s, sq
    out = res
    if Mp != M or Np != N:
        out = out[:M, :N]
    return out


# ---------------------------------------------------------------------------
# Conv2d (NHWC) = bf16 NHWC im2col (glue, no transpose) + fused Pallas matmul
# ---------------------------------------------------------------------------
@partial(jax.jit, static_argnames=("stride", "padding", "act", "out_dtype", "return_stats"))
def _conv2d_nhwc_impl(x, w, b, *, stride, padding, act, out_dtype, return_stats):
    # w is in torch layout (O, C, kh, kw)
    O, C, kh, kw = w.shape
    if x.dtype != jnp.bfloat16:
        x = x.astype(jnp.bfloat16)          # cast BEFORE im2col (halves A traffic)
    xp = x
    if padding > 0:
        xp = jnp.pad(x, ((0, 0), (padding, padding), (padding, padding), (0, 0)))
    B, Hp, Wp, _ = xp.shape
    Ho = (Hp - kh) // stride + 1
    Wo = (Wp - kw) // stride + 1

    if kh == 1 and kw == 1:
        # 1x1 conv: pure (strided) reshape, no patch materialization.
        A = xp[:, ::stride, ::stride, :].reshape(B * Ho * Wo, C)
    else:
        # TODO(synk): implicit (in-kernel) tap-reduction im2col not implemented;
        # patches are built explicitly but in bf16 / NHWC order (no transpose).
        taps = [xp[:, i:i + stride * (Ho - 1) + 1:stride,
                   j:j + stride * (Wo - 1) + 1:stride, :]
                for i in range(kh) for j in range(kw)]
        A = jnp.concatenate(taps, axis=-1).reshape(B * Ho * Wo, kh * kw * C)

    # weight rows in the same (i, j, c) ordering as the im2col columns
    Wm = w.transpose(2, 3, 1, 0).reshape(kh * kw * C, O)
    res = _fused_matmul_bias_act(A, Wm, b, act, out_dtype=out_dtype,
                                 return_stats=return_stats,
                                 m_group=(Ho * Wo if return_stats else None))
    if return_stats:
        out, s, sq = res
        return out.reshape(B, Ho, Wo, O), s, sq
    return res.reshape(B, Ho, Wo, O)


def conv2d(x, p, stride=1, padding=0, act="none", out_dtype=jnp.bfloat16,
           return_stats=False):
    return _conv2d_nhwc_impl(x, p["w"], p["b"], stride=stride, padding=padding,
                             act=act, out_dtype=out_dtype, return_stats=return_stats)


# conv -> instance norm (-> relu), with the norm statistics fused into the
# matmul epilogue so only one normalize+relu elementwise pass remains.
@partial(jax.jit, static_argnames=("stride", "padding", "relu"))
def _conv_instnorm(x, p, *, stride, padding, relu, eps=1e-5):
    O, C, kh, kw = p["w"].shape
    B, H, W, _ = x.shape
    Ho = (H + 2 * padding - kh) // stride + 1
    Wo = (W + 2 * padding - kw) // stride + 1
    cnt = float(Ho * Wo)
    if (Ho * Wo) % 128 == 0:
        y, s, sq = conv2d(x, p, stride, padding, act="none",
                          out_dtype=jnp.bfloat16, return_stats=True)
        nb = s.shape[0]
        s = s.reshape(B, nb // B, O).sum(axis=1)
        sq = sq.reshape(B, nb // B, O).sum(axis=1)
    else:  # fallback: plain-JAX stats (not hit for the shapes used here)
        y = conv2d(x, p, stride, padding, act="none", out_dtype=jnp.bfloat16)
        yf = y.astype(jnp.float32)
        s = yf.sum(axis=(1, 2))
        sq = (yf * yf).sum(axis=(1, 2))
    mean = s / cnt
    var = jnp.maximum(sq / cnt - mean * mean, 0.0)     # biased variance (InstanceNorm2d)
    inv = jax.lax.rsqrt(var + eps)
    out = (y.astype(jnp.float32) - mean[:, None, None, :]) * inv[:, None, None, :]
    if relu:
        out = jax.nn.relu(out)
    return out.astype(jnp.bfloat16)


def conv_norm_relu(x, p, stride, padding, norm_fn):
    if norm_fn == "instance":
        return _conv_instnorm(x, p, stride=stride, padding=padding, relu=True)
    return conv2d(x, p, stride, padding, act="relu")   # norm 'none' -> fuse relu


def conv_norm(x, p, stride, padding, norm_fn):
    if norm_fn == "instance":
        return _conv_instnorm(x, p, stride=stride, padding=padding, relu=False)
    return conv2d(x, p, stride, padding, act="none")


# ---------------------------------------------------------------------------
# Flow helpers (plain-JAX glue, NHWC internally)
# ---------------------------------------------------------------------------
def coords_grid(batch, ht, wd):
    yy, xx = jnp.meshgrid(jnp.arange(ht), jnp.arange(wd), indexing="ij")
    coords = jnp.stack([xx, yy], axis=-1).astype(jnp.float32)   # (ht, wd, 2) (x, y)
    return jnp.broadcast_to(coords[None], (batch, ht, wd, 2))


def bilinear_sample_nhwc(img, x, y):
    """Bilinear sample img (B,H,W,C) at pixel coords x,y (B,ho,wo); zeros outside."""
    # TODO(synk): gather-based bilinear sampling kept in plain JAX (no clean Pallas gather).
    B, H, W, C = img.shape
    x0f = jnp.floor(x); y0f = jnp.floor(y)
    x1f = x0f + 1.0;    y1f = y0f + 1.0
    wx1 = x - x0f; wx0 = 1.0 - wx1
    wy1 = y - y0f; wy0 = 1.0 - wy1
    bidx = jnp.arange(B)[:, None, None]

    def tap(xf, yf, wgt):
        valid = ((xf >= 0) & (xf <= W - 1) & (yf >= 0) & (yf <= H - 1)).astype(img.dtype)
        xi = jnp.clip(xf, 0, W - 1).astype(jnp.int32)
        yi = jnp.clip(yf, 0, H - 1).astype(jnp.int32)
        vals = img[bidx, yi, xi]                                # (B, ho, wo, C)
        return vals * (valid * wgt)[..., None]

    return (tap(x0f, y0f, wx0 * wy0) + tap(x1f, y0f, wx1 * wy0)
            + tap(x0f, y1f, wx0 * wy1) + tap(x1f, y1f, wx1 * wy1))


def bilinear_sample_hw(img, x, y):
    """Channel-less bilinear sample: img (B,H,W), coords x,y (B,...); zeros outside."""
    B, H, W = img.shape
    x0f = jnp.floor(x); y0f = jnp.floor(y)
    x1f = x0f + 1.0;    y1f = y0f + 1.0
    wx1 = x - x0f; wx0 = 1.0 - wx1
    wy1 = y - y0f; wy0 = 1.0 - wy1
    bidx = jnp.arange(B).reshape((B,) + (1,) * (x.ndim - 1))

    def tap(xf, yf, wgt):
        valid = ((xf >= 0) & (xf <= W - 1) & (yf >= 0) & (yf <= H - 1)).astype(jnp.float32)
        xi = jnp.clip(xf, 0, W - 1).astype(jnp.int32)
        yi = jnp.clip(yf, 0, H - 1).astype(jnp.int32)
        vals = img[bidx, yi, xi].astype(jnp.float32)
        return vals * (valid * wgt)

    return (tap(x0f, y0f, wx0 * wy0) + tap(x1f, y0f, wx1 * wy0)
            + tap(x0f, y1f, wx0 * wy1) + tap(x1f, y1f, wx1 * wy1))


@jax.jit
def upflow8(flow):
    """8x bilinear upsample (align_corners=True) then scale by 8 (NHWC flow)."""
    N, H, W, C = flow.shape
    Ho, Wo = 8 * H, 8 * W
    xs = jnp.arange(Wo, dtype=jnp.float32) * (W - 1) / (Wo - 1)
    ys = jnp.arange(Ho, dtype=jnp.float32) * (H - 1) / (Ho - 1)
    x = jnp.broadcast_to(xs[None, None, :], (N, Ho, Wo))
    y = jnp.broadcast_to(ys[None, :, None], (N, Ho, Wo))
    return 8.0 * bilinear_sample_nhwc(flow, x, y)


# ---------------------------------------------------------------------------
# Correlation volume: batched Pallas matmul, bf16 output, fused 1/sqrt(D) scale
# ---------------------------------------------------------------------------
def _corr_kernel(a_ref, b_ref, o_ref, *, scale):
    res = jnp.dot(a_ref[...], b_ref[...], preferred_element_type=jnp.float32) * scale
    o_ref[...] = res.astype(o_ref.dtype)


@jax.jit
def pallas_batched_corr(a, b):
    """a: (N, HW, D), b: (N, D, HW) -> (N, HW, HW) / sqrt(D)  in bf16."""
    N, HW, D = a.shape
    scale = 1.0 / math.sqrt(D)
    pref = _preferred_tile()
    HWp = _round_up(HW, 128)
    tm = _pick_tm(HWp)
    tn = _pick_tile(HWp, pref, 256)
    a_p = a if a.dtype == jnp.bfloat16 else a.astype(jnp.bfloat16)
    b_p = b if b.dtype == jnp.bfloat16 else b.astype(jnp.bfloat16)
    if HWp != HW:
        a_p = jnp.pad(a_p, ((0, 0), (0, HWp - HW), (0, 0)))
        b_p = jnp.pad(b_p, ((0, 0), (0, 0), (0, HWp - HW)))
    out = pl.pallas_call(
        partial(_corr_kernel, scale=scale),
        out_shape=jax.ShapeDtypeStruct((N, HWp, HWp), jnp.bfloat16),
        grid_spec=pltpu.PrefetchScalarGridSpec(
            num_scalar_prefetch=0,
            grid=(N, HWp // tm, HWp // tn),
            in_specs=[pl.BlockSpec((None, tm, D), lambda n, i, j: (n, i, 0)),
                      pl.BlockSpec((None, D, tn), lambda n, i, j: (n, 0, j))],
            out_specs=pl.BlockSpec((None, tm, tn), lambda n, i, j: (n, i, j))),
        compiler_params=pltpu.CompilerParams(
            dimension_semantics=("parallel", "parallel", "parallel")),
    )(a_p, b_p)
    if HWp != HW:
        out = out[:, :HW, :HW]
    return out


def build_corr_pyramid(fmap1, fmap2, num_levels=4):
    N, H, W, D = fmap1.shape
    HW = H * W
    a = fmap1.reshape(N, HW, D)
    b = fmap2.reshape(N, HW, D).transpose(0, 2, 1)              # (N, D, HW)
    corr = pallas_batched_corr(a, b)                            # (N, HW, HW) bf16
    # lane-dense (B2, H, W) layout (no size-1 minor dim) for pooling / lookup
    corr = corr.reshape(N * HW, H, W)
    pyramid = [corr]
    for _ in range(num_levels - 1):
        B2, Hc, Wc = corr.shape
        corr = corr.reshape(B2, Hc // 2, 2, Wc // 2, 2).mean(axis=(2, 4))
        pyramid.append(corr)
    return pyramid


@partial(jax.jit, static_argnames=("radius",))
def corr_lookup(pyramid, coords, *, radius):
    N, H1, W1, _ = coords.shape
    r = radius
    dvals = jnp.linspace(-r, r, 2 * r + 1)
    coords_p = coords.reshape(N * H1 * W1, 2)                   # (B2, 2) (x, y)
    outs = []
    for lvl, corr in enumerate(pyramid):
        cx = coords_p[:, 0] / (2 ** lvl)
        cy = coords_p[:, 1] / (2 ** lvl)
        # sample at (x + d[i], y + d[j]) for the (i, j) correlation channel
        x = cx[:, None, None] + dvals[None, :, None]
        y = cy[:, None, None] + dvals[None, None, :]
        sampled = bilinear_sample_hw(corr, x, y)                # (B2, 2r+1, 2r+1) f32
        outs.append(sampled.reshape(N, H1, W1, (2 * r + 1) ** 2))
    return jnp.concatenate(outs, axis=-1).astype(jnp.float32)   # (N, H1, W1, 4*49)


# ---------------------------------------------------------------------------
# SmallEncoder / SmallUpdateBlock forward (NHWC)
# ---------------------------------------------------------------------------
def bottleneck_fwd(p, x, norm_fn):
    s = p["stride"]
    y = conv_norm_relu(x, p["conv1"], 1, 0, norm_fn)
    y = conv_norm_relu(y, p["conv2"], s, 1, norm_fn)
    y = conv_norm_relu(y, p["conv3"], 1, 0, norm_fn)
    if "down" in p:
        x = conv_norm(x, p["down"], s, 0, norm_fn)
    return jax.nn.relu(x + y)


def small_encoder_fwd(p, x, norm_fn, final_dtype=jnp.bfloat16):
    x = conv_norm_relu(x, p["conv1"], 2, 3, norm_fn)
    for blk in p["layer1"] + p["layer2"] + p["layer3"]:
        x = bottleneck_fwd(blk, x, norm_fn)
    return conv2d(x, p["conv2"], 1, 0, act="none", out_dtype=final_dtype)


@partial(jax.jit, static_argnames=("hdim",))
def update_block_fwd(p, net, inp, corr, flow, hdim=96):
    # SmallMotionEncoder (relu fused into each conv epilogue, bf16 intermediates)
    cor = conv2d(corr, p["enc"]["convc1"], 1, 0, act="relu")
    flo = conv2d(flow, p["enc"]["convf1"], 1, 3, act="relu")
    flo = conv2d(flo, p["enc"]["convf2"], 1, 1, act="relu")
    out = conv2d(jnp.concatenate([cor, flo], axis=-1), p["enc"]["conv"], 1, 1, act="relu")
    motion = jnp.concatenate([out.astype(jnp.float32), flow], axis=-1)   # 80 + 2 = 82
    x = jnp.concatenate([inp, motion], axis=-1)                          # 64 + 82 = 146
    # ConvGRU: convz / convr share input hx -> grouped into one matmul (fused sigmoid)
    hx = jnp.concatenate([net, x], axis=-1)
    wzr = jnp.concatenate([p["gru"]["convz"]["w"], p["gru"]["convr"]["w"]], axis=0)
    bzr = jnp.concatenate([p["gru"]["convz"]["b"], p["gru"]["convr"]["b"]], axis=0)
    zr = conv2d(hx, {"w": wzr, "b": bzr}, 1, 1, act="sigmoid", out_dtype=jnp.float32)
    z, r = zr[..., :hdim], zr[..., hdim:]
    q = conv2d(jnp.concatenate([r * net, x], axis=-1), p["gru"]["convq"], 1, 1,
               act="tanh", out_dtype=jnp.float32)
    net = (1.0 - z) * net + z * q
    # FlowHead (final conv output in f32: feeds the flow / coords accumulation)
    delta = conv2d(conv2d(net, p["fh"]["conv1"], 1, 1, act="relu"),
                   p["fh"]["conv2"], 1, 1, act="none", out_dtype=jnp.float32)
    return net, None, delta


# ---------------------------------------------------------------------------
# RAFT forward
# ---------------------------------------------------------------------------
def raft_forward(params, image1, image2, iters=12, test_mode=True):
    hdim, cdim = 96, 64
    image1 = 2.0 * (image1 / 255.0) - 1.0
    image2 = 2.0 * (image2 / 255.0) - 1.0
    # internal layout is NHWC (pure layout change; semantics unchanged)
    im1 = image1.transpose(0, 2, 3, 1).astype(jnp.bfloat16)
    im2 = image2.transpose(0, 2, 3, 1).astype(jnp.bfloat16)

    # feature network on concatenated batch (matches is_list handling)
    x = jnp.concatenate([im1, im2], axis=0)
    fmaps = small_encoder_fwd(params["fnet"], x, "instance", final_dtype=jnp.bfloat16)
    N = im1.shape[0]
    fmap1, fmap2 = fmaps[:N], fmaps[N:]

    pyramid = build_corr_pyramid(fmap1, fmap2, num_levels=4)

    # context network
    cnet = small_encoder_fwd(params["cnet"], im1, "none", final_dtype=jnp.float32)
    net, inp = cnet[..., :hdim], cnet[..., hdim:hdim + cdim]
    net = jnp.tanh(net)
    inp = jax.nn.relu(inp)

    H, W = im1.shape[1], im1.shape[2]
    coords0 = coords_grid(N, H // 8, W // 8)
    coords1 = coords_grid(N, H // 8, W // 8)

    flow_predictions = []
    for _ in range(iters):
        corr = corr_lookup(pyramid, coords1, radius=3)
        flow = coords1 - coords0
        net, up_mask, delta_flow = update_block_fwd(params["update"], net, inp,
                                                    corr, flow, hdim=hdim)
        coords1 = coords1 + delta_flow
        if not test_mode:
            # RAFT-small: up_mask is None -> 8x bilinear upsample
            flow_predictions.append(upflow8(coords1 - coords0).transpose(0, 3, 1, 2))

    flow_low = (coords1 - coords0).transpose(0, 3, 1, 2)             # -> NCHW
    if test_mode:
        # upflow8 hoisted out of the loop: only the final prediction is needed
        flow_up = upflow8(coords1 - coords0).transpose(0, 3, 1, 2)   # -> NCHW
        return flow_low, flow_up
    return flow_predictions


# ---------------------------------------------------------------------------
# Deterministic parameter init (shapes from the reference __init__)
# ---------------------------------------------------------------------------
def init_conv(key, o, c, kh, kw):
    k1, k2 = jax.random.split(key)
    bound = 1.0 / math.sqrt(c * kh * kw)
    w = jax.random.uniform(k1, (o, c, kh, kw), jnp.float32, -bound, bound)
    b = jax.random.uniform(k2, (o,), jnp.float32, -bound, bound)
    return {"w": w, "b": b}


def init_bottleneck(key, in_planes, planes, stride):
    k1, k2, k3, k4 = jax.random.split(key, 4)
    p = {"conv1": init_conv(k1, planes // 4, in_planes, 1, 1),
         "conv2": init_conv(k2, planes // 4, planes // 4, 3, 3),
         "conv3": init_conv(k3, planes, planes // 4, 1, 1),
         "stride": stride}
    if stride != 1:
        p["down"] = init_conv(k4, planes, in_planes, 1, 1)
    return p


def init_small_encoder(key, output_dim):
    ks = jax.random.split(key, 5)

    def make_layer(k, in_planes, dim, stride):
        ka, kb = jax.random.split(k)
        return [init_bottleneck(ka, in_planes, dim, stride),
                init_bottleneck(kb, dim, dim, 1)]

    return {"conv1": init_conv(ks[0], 32, 3, 7, 7),
            "layer1": make_layer(ks[1], 32, 32, 1),
            "layer2": make_layer(ks[2], 32, 64, 2),
            "layer3": make_layer(ks[3], 64, 96, 2),
            "conv2": init_conv(ks[4], output_dim, 96, 1, 1)}


def init_update_block(key, hdim=96, cdim=64, corr_levels=4, corr_radius=3):
    cor_planes = corr_levels * (2 * corr_radius + 1) ** 2      # 196
    input_dim = 82 + cdim                                      # 146
    ks = jax.random.split(key, 9)
    enc = {"convc1": init_conv(ks[0], 96, cor_planes, 1, 1),
           "convf1": init_conv(ks[1], 64, 2, 7, 7),
           "convf2": init_conv(ks[2], 32, 64, 3, 3),
           "conv":   init_conv(ks[3], 80, 128, 3, 3)}
    gru = {"convz": init_conv(ks[4], hdim, hdim + input_dim, 3, 3),
           "convr": init_conv(ks[5], hdim, hdim + input_dim, 3, 3),
           "convq": init_conv(ks[6], hdim, hdim + input_dim, 3, 3)}
    fh = {"conv1": init_conv(ks[7], 128, hdim, 3, 3),
          "conv2": init_conv(ks[8], 2, 128, 3, 3)}
    return {"enc": enc, "gru": gru, "fh": fh}


def init_raft_params(key):
    k1, k2, k3 = jax.random.split(key, 3)
    return {"fnet": init_small_encoder(k1, output_dim=128),
            "cnet": init_small_encoder(k2, output_dim=96 + 64),
            "update": init_update_block(k3)}


# ---------------------------------------------------------------------------
if __name__ == "__main__":
    key = jax.random.PRNGKey(0)
    k1, k2 = jax.random.split(key)
    # H, W must be multiples of 8; H//8 >= 8 so the 4-level corr pyramid is valid.
    image1 = jax.random.uniform(k1, (1, 3, 128, 128), jnp.float32, 0.0, 255.0)
    image2 = jax.random.uniform(k2, (1, 3, 128, 128), jnp.float32, 0.0, 255.0)

    params = init_raft_params(jax.random.PRNGKey(42))

    flow_low, flow_up = raft_forward(params, image1, image2, iters=2, test_mode=True)
    jax.block_until_ready((flow_low, flow_up))

    assert flow_low.shape == (1, 2, 16, 16), flow_low.shape
    assert flow_up.shape == (1, 2, 128, 128), flow_up.shape
    assert bool(jnp.all(jnp.isfinite(flow_low))) and bool(jnp.all(jnp.isfinite(flow_up)))
    print("KERNEL_OK")
</pallas_src>

<mosaic_0001>
module attributes {stable_mosaic.version = 11 : i64} {
  func.func @_fused_matmul_stats_kernel(%arg0: i32, %arg1: i32, %arg2: memref<512x147xbf16, #tpu.memory_space<vmem>>, %arg3: memref<147x128xbf16, #tpu.memory_space<vmem>>, %arg4: memref<1x128xf32, #tpu.memory_space<vmem>>, %arg5: memref<512x128xbf16, #tpu.memory_space<vmem>>, %arg6: memref<1x1x128xf32, #tpu.memory_space<vmem>>, %arg7: memref<1x1x128xf32, #tpu.memory_space<vmem>>) attributes {dimension_semantics = [#tpu.dimension_semantics<parallel>, #tpu.dimension_semantics<parallel>], iteration_bounds = array<i64: 16, 1>, scalar_prefetch = 0 : i64, scratch_operands = 0 : i64, tpu.core_type = #tpu.core_type<tc>, window_params = [{transform_indices = @transform_0, window_bounds = array<i64: 512, 147>}, {transform_indices = @transform_1, window_bounds = array<i64: 147, 128>}, {transform_indices = @transform_2, window_bounds = array<i64: 1, 128>}, {transform_indices = @transform_3, window_bounds = array<i64: 512, 128>}, {transform_indices = @transform_4, window_bounds = array<i64: 1, 1, 128>}, {transform_indices = @transform_5, window_bounds = array<i64: 1, 1, 128>}]} {
    %c0 = arith.constant 0 : index
    %c0_0 = arith.constant 0 : index
    %0 = vector.load %arg2[%c0, %c0_0] : memref<512x147xbf16, #tpu.memory_space<vmem>>, vector<512x147xbf16>
    %c0_1 = arith.constant 0 : index
    %c0_2 = arith.constant 0 : index
    %1 = vector.load %arg3[%c0_1, %c0_2] : memref<147x128xbf16, #tpu.memory_space<vmem>>, vector<147x128xbf16>
    %cst = arith.constant dense<0.000000e+00> : vector<512x128xf32>
    %2 = tpu.matmul %0, %1, %cst {dimension_numbers = #tpu.dot_dimension_numbers<[1], [0], [0], [1], [0, 0, 1, 1], [], []>} : vector<512x147xbf16>, vector<147x128xbf16>, vector<512x128xf32> -> vector<512x128xf32>
    %c0_3 = arith.constant 0 : index
    %c0_4 = arith.constant 0 : index
    %3 = vector.load %arg4[%c0_3, %c0_4] : memref<1x128xf32, #tpu.memory_space<vmem>>, vector<1x128xf32>
    %4 = vector.broadcast %3 : vector<1x128xf32> to vector<512x128xf32>
    %5 = arith.addf %2, %4 : vector<512x128xf32>
    %6 = arith.truncf %5 : vector<512x128xf32> to vector<512x128xbf16>
    %c0_5 = arith.constant 0 : index
    %c0_6 = arith.constant 0 : index
    %7 = vector.load %arg5[%c0_5, %c0_6] : memref<512x128xbf16, #tpu.memory_space<vmem>>, vector<512x128xbf16>
    tpu.vector_store %arg5[%c0_5, %c0_6], %6 {strides = array<i32>} : memref<512x128xbf16, #tpu.memory_space<vmem>>, vector<512x128xbf16>,
    %cst_7 = arith.constant dense<0.000000e+00> : vector<128xf32>
    %8 = vector.multi_reduction <add>, %5, %cst_7 [0] : vector<512x128xf32> to vector<128xf32>
    %9 = vector.shape_cast %8 : vector<128xf32> to vector<1x128xf32>
    %c0_8 = arith.constant 0 : index
    %c0_9 = arith.constant 0 : index
    %c0_10 = arith.constant 0 : index
    %10 = vector.load %arg6[%c0_8, %c0_9, %c0_10] : memref<1x1x128xf32, #tpu.memory_space<vmem>>, vector<1x1x128xf32>
    %11 = vector.shape_cast %10 : vector<1x1x128xf32> to vector<1x128xf32>
    %12 = vector.shape_cast %9 : vector<1x128xf32> to vector<1x1x128xf32>
    tpu.vector_store %arg6[%c0_8, %c0_9, %c0_10], %12 {strides = array<i32>} : memref<1x1x128xf32, #tpu.memory_space<vmem>>, vector<1x1x128xf32>,
    %13 = arith.mulf %5, %5 : vector<512x128xf32>
    %cst_11 = arith.constant dense<0.000000e+00> : vector<128xf32>
    %14 = vector.multi_reduction <add>, %13, %cst_11 [0] : vector<512x128xf32> to vector<128xf32>
    %15 = vector.shape_cast %14 : vector<128xf32> to vector<1x128xf32>
    %c0_12 = arith.constant 0 : index
    %c0_13 = arith.constant 0 : index
    %c0_14 = arith.constant 0 : index
    %16 = vector.load %arg7[%c0_12, %c0_13, %c0_14] : memref<1x1x128xf32, #tpu.memory_space<vmem>>, vector<1x1x128xf32>
    %17 = vector.shape_cast %16 : vector<1x1x128xf32> to vector<1x128xf32>
    %18 = vector.shape_cast %15 : vector<1x128xf32> to vector<1x1x128xf32>
    tpu.vector_store %arg7[%c0_12, %c0_13, %c0_14], %18 {strides = array<i32>} : memref<1x1x128xf32, #tpu.memory_space<vmem>>, vector<1x1x128xf32>,
    return
  }
  func.func @transform_0(%arg0: i32, %arg1: i32) -> (i32, i32) {
    %c0_i32 = arith.constant 0 : i32
    %c0_i32_0 = arith.constant 0 : i32
    return %arg0, %c0_i32 : i32, i32
  }
  func.func @transform_1(%arg0: i32, %arg1: i32) -> (i32, i32) {
    %c0_i32 = arith.constant 0 : i32
    %c0_i32_0 = arith.constant 0 : i32
    return %c0_i32, %arg1 : i32, i32
  }
  func.func @transform_2(%arg0: i32, %arg1: i32) -> (i32, i32) {
    %c0_i32 = arith.constant 0 : i32
    %c0_i32_0 = arith.constant 0 : i32
    return %c0_i32, %arg1 : i32, i32
  }
  func.func @transform_3(%arg0: i32, %arg1: i32) -> (i32, i32) {
    %c0_i32 = arith.constant 0 : i32
    return %arg0, %arg1 : i32, i32
  }
  func.func @transform_4(%arg0: i32, %arg1: i32) -> (i32, i32, i32) {
    %c0_i32 = arith.constant 0 : i32
    %c0_i32_0 = arith.constant 0 : i32
    return %arg0, %c0_i32, %arg1 : i32, i32, i32
  }
  func.func @transform_5(%arg0: i32, %arg1: i32) -> (i32, i32, i32) {
    %c0_i32 = arith.constant 0 : i32
    %c0_i32_0 = arith.constant 0 : i32
    return %arg0, %c0_i32, %arg1 : i32, i32, i32
  }
}

</mosaic_0001>

<bundles_post_ra>
// kernel: _conv2d_nhwc_impl.1
= control target key start
LH: loop header
LB: loop body
LE: loop exit
PB: predicated region body
PF: predicated region fallthrough
CT: control target
= control target key end

     0   :  { %11 = vsyncpa [#allocation3], 0  ;;  %s3210_s0 = inlined_call_operand.vmem [shape: bf16[8192,147], index: 0, kind: input, shape index: {}]   ;;  %s3211_s1 = inlined_call_operand.vmem [shape: bf16[147,128], index: 1, kind: input, shape index: {}]   ;;  %s3212_s2 = inlined_call_operand.vmem [shape: f32[1,128], index: 2, kind: input, shape index: {}]   ;;  %s3213_s3 = inlined_call_operand.vmem [shape: bf16[8192,128], index: 3, kind: output, shape index: {0}]   ;;  %s3214_s4 = inlined_call_operand.hbm [shape: f32[16,1,128], index: 4, kind: output, shape index: {1}]   ;;  %s3215_s5 = inlined_call_operand.hbm [shape: f32[16,1,128], index: 5, kind: output, shape index: {2}]  }
   0x1   :  { %13 = vsyncpa [#allocation3 + $0x1], 0 }
   0x2   :  { %14 = vsyncpa [#allocation5], 0 }
   0x3   :  { %16 = vsyncpa [#allocation5 + $0x1], 0  ;;  %s2631_s18 = smov 0   ;;  %s2633_s19 = smov 0  }
   0x4   :  { %s2635_s20 = smov 0   ;;  %s2637_s21 = smov 0  }
   0x5   :  { %s2639_s22 = smov 0   ;;  %s2641_s23 = smov 0  }
   0x6 LB: > { %s1854_s24 = sadd.s32 4294967295, %s2595_s23   ;;  %s1855_s25 = sadd.s32 4294967294, %s2595_s23   ;;  %s2595_s23 = sphi %s2641_s23, %s22_s23   ;;  %s2591_s22 = sphi %s2639_s22, %s3222_s22   ;;  %s2587_s21 = sphi %s2637_s21, %s3221_s21   ;;  %s2583_s20 = sphi %s2635_s20, %s3220_s20   ;;  %s2579_s19 = sphi %s2633_s19, %s3219_s19   ;;  %s2575_s18 = sphi %s2631_s18, %s3218_s18  }
   0x7   : > { %s34_s26 = sadd.s32 1, %s2591_s22  ;;  %s149_s27 = sadd.s32 1, %s2583_s20 }
   0x8   : > { %p36_p0 = scmp.ge.s32.totalorder %s34_s26, 16  ;;  %p159_p1 = scmp.ne.s32.totalorder %s2583_s20, %s2579_s19 }
   0x9   : > { %p160_p2 = scmp.eq.s32.totalorder %s1854_s24, 15  ;;  %p165_p3 = scmp.ne.s32.totalorder %s2579_s19, %s2575_s18 }
   0xa   : > { %s3224_s26 = smov (%p36_p0, %s34_s26), 0  ;;  %p166_p5 = scmp.eq.s32.totalorder %s1855_s25, 15 }
   0xb   : > { %p2671_p4 = por %p160_p2, %p159_p1  ;;  %s144_s29 = ssub.s32 %s2591_s22, %s3224_s26 }
   0xc   : > { %p1860_p6 = scmp.ge.s32.totalorder %s2595_s23, 1  ;;  %p147_p7 = scmp.eq.s32.totalorder %s144_s29, 0 }
   0xd   : > { %p2678_p8 = por %p166_p5, %p165_p3  ;;  %p235_p9 = scmp.lt.s32.totalorder %s2595_s23, 17 }
   0xe   : > { %s2684_s6 = scalar_select %p147_p7, %s2583_s20, %s149_s27  }
   0xf   : > { %p236_p10 = pnand %p1860_p6, %p235_p9 }
  0x10   : > { %v2379_v0 = vld [vmem:[%s3211_s1] sm:$0xff] (!%p236_p10)   ;;  %v2597_v1 = vmov (!%p236_p10), 0   ;;  %v2380_v2 = vld [vmem:[%s3211_s1 + $0x8] sm:$0xff] (!%p236_p10)   ;;  %v2381_v3 = vld [vmem:[%s3211_s1 + $0x10] sm:$0xff] (!%p236_p10)   ;;  %s1861_s13 = sshll.u32 (!%p236_p10), %s2587_s21, 6  ;;  %vm741_vm0 = vcmask (!%p236_p10), 154624  }
  0x11   : > { %239 = sbr.rel (%p236_p10) target bundleno = 508 (0x1fc), region = 32  ;;  %845 = vmatprep.subr.bf16.mxu0 (!%p236_p10), %v2597_v1  ;;  %2297 = vmatprep.subr.bf16.mxu1 (!%p236_p10), %v2597_v1  ;;  %p283_p11 = scmp.lt.s32.totalorder (!%p236_p10), %s1861_s13, 1023  ;;  %v2382_v4 = vld [vmem:[%s3211_s1 + $0x18] sm:$0xff] (!%p236_p10)   ;;  %v2383_v5 = vld [vmem:[%s3211_s1 + $0x20] sm:$0xff] (!%p236_p10)   ;;  %v2384_v7 = vld [vmem:[%s3211_s1 + $0x28] sm:$0xff] (!%p236_p10)   ;;  %vm838_vm1 = vcmask (!%p236_p10), 1040384  }
  0x12   : > { %846 = vmatpush1.bf16.msra.mxu0 (!%p236_p10), %v2379_v0  ;;  %2307 = vmatpush1.bf16.msra.mxu1 (!%p236_p10), %v2379_v0  ;;  %v2385_v8 = vld [vmem:[%s3211_s1 + $0x30] sm:$0xff] (!%p236_p10)   ;;  %v2386_v10 = vld [vmem:[%s3211_s1 + $0x38] sm:$0xff] (!%p236_p10)   ;;  %vm839_vm2 = vcmask (!%p236_p10), 1041408   ;;  %v2598_v11 = vmov (!%p236_p10), 65535   ;;  %v2387_v13 = vld [vmem:[%s3211_s1 + $0x40] sm:$0xff] (!%p236_p10)   ;;  %s2037_s9 = sshll.u32 (!%p236_p10), %s2587_s21, 4 }
  0x13   : > { %847 = vmatprep.subr.bf16.mxu0 (!%p236_p10), %v2597_v1  ;;  %2298 = vmatprep.subr.bf16.mxu1 (!%p236_p10), %v2597_v1  ;;  %v840_v12 = vsel (!%p236_p10), %vm838_vm1, 4294967295, %v2598_v11  ;;  %v2388_v14 = vld [vmem:[%s3211_s1 + $0x48] ss:$0 sps:$4 sm:$0x33] (!%p236_p10)   ;;  %s3131_s17 = scalar_lea.hbm (!%p236_p10), %s3214_s4, %s2037_s9  ;;  %s3138_s27 = scalar_lea.hbm (!%p236_p10), %s3215_s5, %s2037_s9 }
  0x14   : > { %v841_v15 = vsel (!%p236_p10), %vm839_vm2, %v840_v12, 0  ;;  %s2599_s7 = smov (!%p236_p10), [#allocation2]  }
  0x15   : > { %v843_v16 = vand.u32 (!%p236_p10), %v2388_v14, %v841_v15  ;;  %v2824_v15 = vld [vmem:[%s3212_s2] ss:$0 sm:$0xff] (!%p236_p10) }
  0x16   : > { %848 = vmatpush1.bf16.msra.mxu0 (!%p236_p10), %v2380_v2  ;;  %2308 = vmatpush1.bf16.msra.mxu1 (!%p236_p10), %v2380_v2 }
  0x17   : > { %849 = vmatprep.subr.bf16.mxu0 (!%p236_p10), %v2597_v1  ;;  %2299 = vmatprep.subr.bf16.mxu1 (!%p236_p10), %v2597_v1 }
  0x18   : > { %s3226_s13 = smov (!%p283_p11, %s1861_s13), 1023 }
  0x19   : > { %s2041_s16 = sshll.u32 %s3226_s13, 3  ;;  %s1865_s29 = sshll.u32 %s3226_s13, 2 }
  0x1a   : > { %850 = vmatpush1.bf16.msra.mxu0 %v2381_v3  ;;  %2309 = vmatpush1.bf16.msra.mxu1 %v2381_v3  ;;  %s2705_s25 = scalar_lea.vmem %s3210_s0, %s2041_s16  ;;  %s2838_s8 = scalar_lea.vmem %s3213_s3, %s1865_s29 }
  0x1b   : > { %851 = vmatprep.subr.bf16.mxu0 %v2597_v1  ;;  %2300 = vmatprep.subr.bf16.mxu1 %v2597_v1  ;;  %v2391_v6 = vld [vmem:[%s2705_s25 + $0x4] ss:$8 sps:$4 sm:$0xff]   ;;  %v2389_v17 = vld [vmem:[%s2705_s25] ss:$8 sps:$4 sm:$0xff]   ;;  %v2392_v18 = vld [vmem:[%s2705_s25 + $0x14] ss:$8 sps:$4 sm:$0xff]  }
  0x1c   : > { %1941 = vmatprep.mubr.msk.bf16.mxu0 %vm741_vm0, %v2391_v6  ;;  %v2415_v9 = vld [vmem:[%s2705_s25 + $0x104] ss:$8 sps:$4 sm:$0xff]   ;;  %v2413_v19 = vld [vmem:[%s2705_s25 + $0x100] ss:$8 sps:$4 sm:$0xff]   ;;  %v2419_v20 = vld [vmem:[%s2705_s25 + $0x114] ss:$8 sps:$4 sm:$0xff]  }
  0x1d   : > { %1957 = vmatprep.mubr.msk.bf16.mxu1 %vm741_vm0, %v2415_v9  ;;  %v2394_v21 = vld [vmem:[%s2705_s25 + $0x10] ss:$8 sps:$4 sm:$0xff]   ;;  %v2395_v22 = vld [vmem:[%s2705_s25 + $0x24] ss:$8 sps:$4 sm:$0xff]   ;;  %v2397_v25 = vld [vmem:[%s2705_s25 + $0x20] ss:$8 sps:$4 sm:$0xff]  }
  0x1e   : > { %852 = vmatpush1.bf16.msra.mxu0 %v2382_v4  ;;  %2310 = vmatpush1.bf16.msra.mxu1 %v2382_v4  ;;  %v2421_v23 = vld [vmem:[%s2705_s25 + $0x110] ss:$8 sps:$4 sm:$0xff]   ;;  %v2425_v24 = vld [vmem:[%s2705_s25 + $0x124] ss:$8 sps:$4 sm:$0xff]   ;;  %v2398_v26 = vld [vmem:[%s2705_s25 + $0x34] ss:$8 sps:$4 sm:$0xff]  }
  0x1f   : > { %853 = vmatprep.subr.bf16.mxu0 %v2597_v1  ;;  %2301 = vmatprep.subr.bf16.mxu1 %v2597_v1  ;;  %v2427_v27 = vld [vmem:[%s2705_s25 + $0x120] ss:$8 sps:$4 sm:$0xff]   ;;  %v2431_v28 = vld [vmem:[%s2705_s25 + $0x134] ss:$8 sps:$4 sm:$0xff]   ;;  %v2400_v29 = vld [vmem:[%s2705_s25 + $0x30] ss:$8 sps:$4 sm:$0xff]  }
  0x20   : > { %v2433_v30 = vld [vmem:[%s2705_s25 + $0x130] ss:$8 sps:$4 sm:$0xff]   ;;  %v2401_v31 = vld [vmem:[%s2705_s25 + $0x44] ss:$8 sps:$4 sm:$0xff]   ;;  %v2403_v33 = vld [vmem:[%s2705_s25 + $0x40] ss:$8 sps:$4 sm:$0xff]  }
  0x21   : > { %v2437_v32 = vld [vmem:[%s2705_s25 + $0x144] ss:$8 sps:$4 sm:$0xff]   ;;  %v2439_v34 = vld [vmem:[%s2705_s25 + $0x140] ss:$8 sps:$4 sm:$0xff]   ;;  %v2404_v35 = vld [vmem:[%s2705_s25 + $0x54] ss:$8 sps:$4 sm:$0xff]  }
  0x22   : > { %854 = vmatpush1.bf16.msra.mxu0 %v2383_v5  ;;  %2311 = vmatpush1.bf16.msra.mxu1 %v2383_v5  ;;  %v2443_v36 = vld [vmem:[%s2705_s25 + $0x154] ss:$8 sps:$4 sm:$0xff]   ;;  %v2406_v37 = vld [vmem:[%s2705_s25 + $0x50] ss:$8 sps:$4 sm:$0xff]   ;;  %v2407_v39 = vld [vmem:[%s2705_s25 + $0x64] ss:$8 sps:$4 sm:$0xff]  }
  0x23   : > { %855 = vmatprep.subr.bf16.mxu0 %v2597_v1  ;;  %2302 = vmatprep.subr.bf16.mxu1 %v2597_v1  ;;  %v2445_v38 = vld [vmem:[%s2705_s25 + $0x150] ss:$8 sps:$4 sm:$0xff]   ;;  %v2449_v40 = vld [vmem:[%s2705_s25 + $0x164] ss:$8 sps:$4 sm:$0xff]   ;;  %v2409_v41 = vld [vmem:[%s2705_s25 + $0x60] ss:$8 sps:$4 sm:$0xff]  }
  0x24   : > { %v2451_v42 = vld [vmem:[%s2705_s25 + $0x160] ss:$8 sps:$4 sm:$0xff]   ;;  %v2410_v43 = vld [vmem:[%s2705_s25 + $0x74] ss:$8 sps:$4 sm:$0xff]   ;;  %v2412_v45 = vld [vmem:[%s2705_s25 + $0x70] ss:$8 sps:$4 sm:$0xff]  }
  0x25   : > { %v2455_v44 = vld [vmem:[%s2705_s25 + $0x174] ss:$8 sps:$4 sm:$0xff]   ;;  %v2457_v46 = vld [vmem:[%s2705_s25 + $0x170] ss:$8 sps:$4 sm:$0xff]   ;;  %v2416_v47 = vld [vmem:[%s2705_s25 + $0x84] ss:$8 sps:$4 sm:$0xff]  }
  0x26   : > { %856 = vmatpush1.bf16.msra.mxu0 %v2384_v7  ;;  %2312 = vmatpush1.bf16.msra.mxu1 %v2384_v7  ;;  %v2461_v48 = vld [vmem:[%s2705_s25 + $0x184] ss:$8 sps:$4 sm:$0xff]   ;;  %v2418_v49 = vld [vmem:[%s2705_s25 + $0x80] ss:$8 sps:$4 sm:$0xff]   ;;  %v2422_v51 = vld [vmem:[%s2705_s25 + $0x94] ss:$8 sps:$4 sm:$0xff]  }
  0x27   : > { %857 = vmatprep.subr.bf16.mxu0 %v2597_v1  ;;  %2303 = vmatprep.subr.bf16.mxu1 %v2597_v1  ;;  %v2463_v50 = vld [vmem:[%s2705_s25 + $0x180] ss:$8 sps:$4 sm:$0xff]   ;;  %v2464_v52 = vld [vmem:[%s2705_s25 + $0x194] ss:$8 sps:$4 sm:$0xff]   ;;  %v2424_v53 = vld [vmem:[%s2705_s25 + $0x90] ss:$8 sps:$4 sm:$0xff]  }
  0x28   : > { %v2466_v54 = vld [vmem:[%s2705_s25 + $0x190] ss:$8 sps:$4 sm:$0xff]   ;;  %v2428_v55 = vld [vmem:[%s2705_s25 + $0xa4] ss:$8 sps:$4 sm:$0xff]   ;;  %v2430_v57 = vld [vmem:[%s2705_s25 + $0xa0] ss:$8 sps:$4 sm:$0xff]  }
  0x29   : > { %v2467_v56 = vld [vmem:[%s2705_s25 + $0x1a4] ss:$8 sps:$4 sm:$0xff]   ;;  %v2469_v58 = vld [vmem:[%s2705_s25 + $0x1a0] ss:$8 sps:$4 sm:$0xff]   ;;  %v2434_v59 = vld [vmem:[%s2705_s25 + $0xb4] ss:$8 sps:$4 sm:$0xff]  }
  0x2a   : > { %858 = vmatpush1.bf16.msra.mxu0 %v2385_v8  ;;  %2313 = vmatpush1.bf16.msra.mxu1 %v2385_v8  ;;  %v2470_v60 = vld [vmem:[%s2705_s25 + $0x1b4] ss:$8 sps:$4 sm:$0xff]   ;;  %v2436_v61 = vld [vmem:[%s2705_s25 + $0xb0] ss:$8 sps:$4 sm:$0xff]   ;;  %v2440_v63 = vld [vmem:[%s2705_s25 + $0xc4] ss:$8 sps:$4 sm:$0xff]  }
  0x2b   : > { %859 = vmatprep.subr.bf16.mxu0 %v2597_v1  ;;  %2304 = vmatprep.subr.bf16.mxu1 %v2597_v1  ;;  %v2472_v62 = vld [vmem:[%s2705_s25 + $0x1b0] ss:$8 sps:$4 sm:$0xff]   ;;  %v2473_v0 = vld [vmem:[%s2705_s25 + $0x1c4] ss:$8 sps:$4 sm:$0xff]   ;;  %v2475_v2 = vld [vmem:[%s2705_s25 + $0x1c0] ss:$8 sps:$4 sm:$0xff]  }
  0x2c   : > { %v2446_v3 = vld [vmem:[%s2705_s25 + $0xd4] ss:$8 sps:$4 sm:$0xff]   ;;  %v2448_v5 = vld [vmem:[%s2705_s25 + $0xd0] ss:$8 sps:$4 sm:$0xff]   ;;  %v2452_v7 = vld [vmem:[%s2705_s25 + $0xe4] ss:$8 sps:$4 sm:$0xff]  }
  0x2d   : > { %v2476_v4 = vld [vmem:[%s2705_s25 + $0x1d4] ss:$8 sps:$4 sm:$0xff]   ;;  %v2478_v6 = vld [vmem:[%s2705_s25 + $0x1d0] ss:$8 sps:$4 sm:$0xff]   ;;  %v2479_v8 = vld [vmem:[%s2705_s25 + $0x1e4] ss:$8 sps:$4 sm:$0xff]  }
  0x2e   : > { %860 = vmatpush1.bf16.msra.mxu0 %v2386_v10  ;;  %2314 = vmatpush1.bf16.msra.mxu1 %v2386_v10  ;;  %v2454_v9 = vld [vmem:[%s2705_s25 + $0xe0] ss:$8 sps:$4 sm:$0xff]   ;;  %v2458_v11 = vld [vmem:[%s2705_s25 + $0xf4] ss:$8 sps:$4 sm:$0xff]   ;;  %v2484_v14 = vld [vmem:[%s2705_s25 + $0x1f0] ss:$8 sps:$4 sm:$0xff]  }
  0x2f   : > { %861 = vmatprep.subr.bf16.mxu0 %v2597_v1  ;;  %2305 = vmatprep.subr.bf16.mxu1 %v2597_v1  ;;  %v2481_v10 = vld [vmem:[%s2705_s25 + $0x1e0] ss:$8 sps:$4 sm:$0xff]   ;;  %v2482_v12 = vld [vmem:[%s2705_s25 + $0x1f4] ss:$8 sps:$4 sm:$0xff]   ;;  %s3121_s13 = sand.u32 1, %s2579_s19  }
  0x30   : > { %s275_s10 = scalar_lea.vmem [#allocation2], %s3121_s13  ;;  %s281_s12 = scalar_lea.vmem [#allocation4], %s3121_s13 }
  0x31   : > { %s1688_s11 = sshll.u32 %s275_s10, 4  ;;  %s1702_s14 = sshll.u32 %s281_s12, 4  ;;  %s3133_s11 = int_to_ptr.vmem [resolvable:$true] %s1688_s11  ;;  %s3140_s14 = int_to_ptr.vmem [resolvable:$true] %s1702_s14 }
  0x32   : > { %862 = vmatpush1.bf16.msra.mxu0 %v2387_v13  ;;  %2315 = vmatpush1.bf16.msra.mxu1 %v2387_v13  ;;  %v2460_v13 = vld [vmem:[%s2705_s25 + $0xf0] ss:$8 sps:$4 sm:$0xff]   ;;  %s1667_s29 = scalar_lea.sflag [#allocation3], %s3121_s13 }
  0x33   : > { %863 = vmatprep.subr.bf16.mxu0 %v2597_v1  ;;  %2306 = vmatprep.subr.bf16.mxu1 %v2597_v1  ;;  %v2442_v1 = vld [vmem:[%s2705_s25 + $0xc0] ss:$8 sps:$4 sm:$0xff]   ;;  %s2485_s25 = scalar_lea.vmem %s3133_s11, 16 }
  0x34   : > { %p2486_p12 = scmp.ne.s32.totalorder %s3133_s11, %s2485_s25 }
  0x36   : > { %864 = vmatpush1.bf16.msra.mxu0 %v843_v16  ;;  %2316 = vmatpush1.bf16.msra.mxu1 %v843_v16  ;;  %p2487_p13 = pnand %p2486_p12, %p2671_p4 }
  0x38   : > { %p2488_p0 = pneg %p2487_p13 }
  0x39   : > { %878 = vmatmul.mubr.bf16.vlgmr.msra.gmra.mrb[0].mxu0 %v2389_v17  ;;  %1006 = vmatmul.mubr.bf16.vlgmr.msra.gmra.mrb[0].mxu1 %v2413_v19 }
  0x3a   : > { %1942 = vmatprep.mubr.msk.bf16.mxu0 %vm741_vm0, %v2392_v18  ;;  %1958 = vmatprep.mubr.msk.bf16.mxu1 %vm741_vm0, %v2419_v20 }
  0x41   : > { %886 = vmatmul.mubr.bf16.gmra.mrb[4].mxu0 %v2394_v21  ;;  %1014 = vmatmul.mubr.bf16.gmra.mrb[4].mxu1 %v2421_v23 }
  0x42   : > { %1943 = vmatprep.mubr.msk.bf16.mxu0 %vm741_vm0, %v2395_v22  ;;  %1959 = vmatprep.mubr.msk.bf16.mxu1 %vm741_vm0, %v2425_v24 }
  0x49   : > { %894 = vmatmul.mubr.bf16.gmra.mrb[8].mxu0 %v2397_v25  ;;  %1022 = vmatmul.mubr.bf16.gmra.mrb[8].mxu1 %v2427_v27 }
  0x4a   : > { %1944 = vmatprep.mubr.msk.bf16.mxu0 %vm741_vm0, %v2398_v26  ;;  %1960 = vmatprep.mubr.msk.bf16.mxu1 %vm741_vm0, %v2431_v28 }
  0x51   : > { %902 = vmatmul.mubr.bf16.gmra.mrb[12].mxu0 %v2400_v29  ;;  %1030 = vmatmul.mubr.bf16.gmra.mrb[12].mxu1 %v2433_v30 }
  0x52   : > { %1945 = vmatprep.mubr.msk.bf16.mxu0 %vm741_vm0, %v2401_v31  ;;  %1961 = vmatprep.mubr.msk.bf16.mxu1 %vm741_vm0, %v2437_v32 }
  0x59   : > { %910 = vmatmul.mubr.bf16.gmra.mrb[16].mxu0 %v2403_v33  ;;  %1038 = vmatmul.mubr.bf16.gmra.mrb[16].mxu1 %v2439_v34 }
  0x5a   : > { %1946 = vmatprep.mubr.msk.bf16.mxu0 %vm741_vm0, %v2404_v35  ;;  %1962 = vmatprep.mubr.msk.bf16.mxu1 %vm741_vm0, %v2443_v36 }
  0x61   : > { %918 = vmatmul.mubr.bf16.gmra.mrb[20].mxu0 %v2406_v37  ;;  %1046 = vmatmul.mubr.bf16.gmra.mrb[20].mxu1 %v2445_v38 }
  0x62   : > { %1947 = vmatprep.mubr.msk.bf16.mxu0 %vm741_vm0, %v2407_v39  ;;  %1963 = vmatprep.mubr.msk.bf16.mxu1 %vm741_vm0, %v2449_v40 }
  0x69   : > { %926 = vmatmul.mubr.bf16.gmra.mrb[24].mxu0 %v2409_v41  ;;  %1054 = vmatmul.mubr.bf16.gmra.mrb[24].mxu1 %v2451_v42 }
  0x6a   : > { %1948 = vmatprep.mubr.msk.bf16.mxu0 %vm741_vm0, %v2410_v43  ;;  %1964 = vmatprep.mubr.msk.bf16.mxu1 %vm741_vm0, %v2455_v44 }
  0x71   : > { %934 = vmatmul.mubr.bf16.gmra.mrb[28].mxu0 %v2412_v45  ;;  %1062 = vmatmul.mubr.bf16.gmra.mrb[28].mxu1 %v2457_v46 }
  0x72   : > { %1949 = vmatprep.mubr.msk.bf16.mxu0 %vm741_vm0, %v2416_v47  ;;  %1965 = vmatprep.mubr.msk.bf16.mxu1 %vm741_vm0, %v2461_v48 }
  0x79   : > { %942 = vmatmul.mubr.bf16.gmra.mrb[32].mxu0 %v2418_v49  ;;  %1070 = vmatmul.mubr.bf16.gmra.mrb[32].mxu1 %v2463_v50 }
  0x7a   : > { %1950 = vmatprep.mubr.msk.bf16.mxu0 %vm741_vm0, %v2422_v51  ;;  %1966 = vmatprep.mubr.msk.bf16.mxu1 %vm741_vm0, %v2464_v52 }
  0x81   : > { %950 = vmatmul.mubr.bf16.gmra.mrb[36].mxu0 %v2424_v53  ;;  %1078 = vmatmul.mubr.bf16.gmra.mrb[36].mxu1 %v2466_v54 }
  0x82   : > { %1951 = vmatprep.mubr.msk.bf16.mxu0 %vm741_vm0, %v2428_v55  ;;  %1967 = vmatprep.mubr.msk.bf16.mxu1 %vm741_vm0, %v2467_v56 }
  0x89   : > { %958 = vmatmul.mubr.bf16.gmra.mrb[40].mxu0 %v2430_v57  ;;  %1086 = vmatmul.mubr.bf16.gmra.mrb[40].mxu1 %v2469_v58 }
  0x8a   : > { %1952 = vmatprep.mubr.msk.bf16.mxu0 %vm741_vm0, %v2434_v59  ;;  %1968 = vmatprep.mubr.msk.bf16.mxu1 %vm741_vm0, %v2470_v60 }
  0x91   : > { %966 = vmatmul.mubr.bf16.gmra.mrb[44].mxu0 %v2436_v61  ;;  %1094 = vmatmul.mubr.bf16.gmra.mrb[44].mxu1 %v2472_v62 }
  0x92   : > { %1953 = vmatprep.mubr.msk.bf16.mxu0 %vm741_vm0, %v2440_v63  ;;  %1969 = vmatprep.mubr.msk.bf16.mxu1 %vm741_vm0, %v2473_v0 }
  0x99   : > { %974 = vmatmul.mubr.bf16.gmra.mrb[48].mxu0 %v2442_v1  ;;  %1102 = vmatmul.mubr.bf16.gmra.mrb[48].mxu1 %v2475_v2 }
  0x9a   : > { %1954 = vmatprep.mubr.msk.bf16.mxu0 %vm741_vm0, %v2446_v3  ;;  %1970 = vmatprep.mubr.msk.bf16.mxu1 %vm741_vm0, %v2476_v4 }
  0xa1   : > { %982 = vmatmul.mubr.bf16.gmra.mrb[52].mxu0 %v2448_v5  ;;  %1110 = vmatmul.mubr.bf16.gmra.mrb[52].mxu1 %v2478_v6 }
  0xa2   : > { %1955 = vmatprep.mubr.msk.bf16.mxu0 %vm741_vm0, %v2452_v7  ;;  %1971 = vmatprep.mubr.msk.bf16.mxu1 %vm741_vm0, %v2479_v8 }
  0xa9   : > { %990 = vmatmul.mubr.bf16.gmra.mrb[56].mxu0 %v2454_v9  ;;  %1118 = vmatmul.mubr.bf16.gmra.mrb[56].mxu1 %v2481_v10 }
  0xaa   : > { %1956 = vmatprep.mubr.msk.bf16.mxu0 %vm741_vm0, %v2458_v11  ;;  %1972 = vmatprep.mubr.msk.bf16.mxu1 %vm741_vm0, %v2482_v12 }
  0xb1   : > { %998 = vmatmul.mubr.bf16.gmra.mrb[60].mxu0 %v2460_v13  ;;  %1126 = vmatmul.mubr.bf16.gmra.mrb[60].mxu1 %v2484_v14 }
 0x10c   : > { %v879_v16 = vpop.f32.mrb[0].mxu0  ;;  %v1007_v17 = vpop.f32.mrb[0].mxu1 }
 0x10d   : > { %v880_v18 = vadd.f32 %v2824_v15, %v879_v16  ;;  %v881_v19 = vpop.f32.mrb[1].mxu0  ;;  %v2829_v20 = vadd.f32 %v2824_v15, %v1007_v17  ;;  %v1009_v21 = vpop.f32.mrb[1].mxu1 }
 0x10e   : > { %v882_v22 = vpop.f32.mrb[2].mxu0  ;;  %v1010_v23 = vpop.f32.mrb[2].mxu1 }
 0x10f   : > { %v883_v24 = vadd.f32 %v2824_v15, %v882_v22  ;;  %v884_v25 = vpop.f32.mrb[3].mxu0  ;;  %v2833_v26 = vadd.f32 %v2824_v15, %v1010_v23  ;;  %v1012_v27 = vpop.f32.mrb[3].mxu1  ;;  %v1524_v28 = vmul.f32 %v880_v18, %v880_v18 }
 0x111   : > { %v2109_v29 = vpack.c.bf16 %v883_v24, %v880_v18  ;;  %v1454_v30 = vadd.f32 %v883_v24, %v880_v18  ;;  %v1525_v31 = vmul.f32 %v883_v24, %v883_v24  ;;  %v2189_v32 = vpack.c.bf16 %v2833_v26, %v2829_v20 }
 0x113   : > { %2110 = vst [vmem:[%s2838_s8] sm:$0xff] %v2109_v29   ;;  %v1588_v33 = vadd.f32 %v1525_v31, %v1524_v28  ;;  %2281 = vst [vmem:[%s2838_s8 + $0x80] sm:$0xff] %v2189_v32  }
 0x114   : > { %v887_v34 = vpop.f32.mrb[4].mxu0  ;;  %v1015_v35 = vpop.f32.mrb[4].mxu1 }
 0x115   : > { %v888_v36 = vadd.f32 %v2824_v15, %v887_v34  ;;  %v889_v37 = vpop.f32.mrb[5].mxu0  ;;  %v1017_v38 = vpop.f32.mrb[5].mxu1  ;;  %v2846_v40 = vadd.f32 %v2824_v15, %v1015_v35 }
 0x116   : > { %v890_v39 = vpop.f32.mrb[6].mxu0  ;;  %v1018_v41 = vpop.f32.mrb[6].mxu1 }
 0x117   : > { %v1455_v42 = vadd.f32 %v1454_v30, %v888_v36  ;;  %v1526_v43 = vmul.f32 %v888_v36, %v888_v36  ;;  %v891_v44 = vadd.f32 %v2824_v15, %v890_v39  ;;  %v892_v45 = vpop.f32.mrb[7].mxu0  ;;  %v1020_v46 = vpop.f32.mrb[7].mxu1  ;;  %v2850_v47 = vadd.f32 %v2824_v15, %v1018_v41 }
 0x119   : > { %v1589_v48 = vadd.f32 %v1588_v33, %v1526_v43  ;;  %v2114_v49 = vpack.c.bf16 %v891_v44, %v888_v36  ;;  %v1456_v50 = vadd.f32 %v1455_v42, %v891_v44  ;;  %v1527_v51 = vmul.f32 %v891_v44, %v891_v44 }
 0x11a   : > { %v2194_v52 = vpack.c.bf16 %v2850_v47, %v2846_v40 }
 0x11b   : > { %2266 = vst [vmem:[%s2838_s8 + $0x8] sm:$0xff] %v2114_v49   ;;  %v1590_v53 = vadd.f32 %v1589_v48, %v1527_v51 }
 0x11c   : > { %v895_v54 = vpop.f32.mrb[8].mxu0  ;;  %2282 = vst [vmem:[%s2838_s8 + $0x88] sm:$0xff] %v2194_v52   ;;  %v1023_v55 = vpop.f32.mrb[8].mxu1 }
 0x11d   : > { %v896_v56 = vadd.f32 %v2824_v15, %v895_v54  ;;  %v897_v57 = vpop.f32.mrb[9].mxu0  ;;  %v1025_v58 = vpop.f32.mrb[9].mxu1  ;;  %v2858_v60 = vadd.f32 %v2824_v15, %v1023_v55 }
 0x11e   : > { %v898_v59 = vpop.f32.mrb[10].mxu0  ;;  %v1026_v61 = vpop.f32.mrb[10].mxu1 }
 0x11f   : > { %v1457_v62 = vadd.f32 %v1456_v50, %v896_v56  ;;  %v1528_v63 = vmul.f32 %v896_v56, %v896_v56  ;;  %v899_v0 = vadd.f32 %v2824_v15, %v898_v59  ;;  %v900_v1 = vpop.f32.mrb[11].mxu0  ;;  %v1028_v2 = vpop.f32.mrb[11].mxu1  ;;  %v2862_v3 = vadd.f32 %v2824_v15, %v1026_v61 }
 0x121   : > { %v1591_v4 = vadd.f32 %v1590_v53, %v1528_v63  ;;  %v2119_v5 = vpack.c.bf16 %v899_v0, %v896_v56  ;;  %v1458_v6 = vadd.f32 %v1457_v62, %v899_v0  ;;  %v1529_v7 = vmul.f32 %v899_v0, %v899_v0 }
 0x122   : > { %v2199_v8 = vpack.c.bf16 %v2862_v3, %v2858_v60 }
 0x123   : > { %2267 = vst [vmem:[%s2838_s8 + $0x10] sm:$0xff] %v2119_v5   ;;  %v1592_v9 = vadd.f32 %v1591_v4, %v1529_v7 }
 0x124   : > { %v903_v10 = vpop.f32.mrb[12].mxu0  ;;  %2283 = vst [vmem:[%s2838_s8 + $0x90] sm:$0xff] %v2199_v8   ;;  %v1031_v11 = vpop.f32.mrb[12].mxu1 }
 0x125   : > { %v904_v12 = vadd.f32 %v2824_v15, %v903_v10  ;;  %v905_v13 = vpop.f32.mrb[13].mxu0  ;;  %v1033_v14 = vpop.f32.mrb[13].mxu1  ;;  %v2870_v17 = vadd.f32 %v2824_v15, %v1031_v11 }
 0x126   : > { %v906_v16 = vpop.f32.mrb[14].mxu0  ;;  %v1034_v18 = vpop.f32.mrb[14].mxu1 }
 0x127   : > { %v1459_v19 = vadd.f32 %v1458_v6, %v904_v12  ;;  %v1530_v21 = vmul.f32 %v904_v12, %v904_v12  ;;  %v907_v22 = vadd.f32 %v2824_v15, %v906_v16  ;;  %v908_v23 = vpop.f32.mrb[15].mxu0  ;;  %v1036_v24 = vpop.f32.mrb[15].mxu1  ;;  %v2874_v25 = vadd.f32 %v2824_v15, %v1034_v18 }
 0x129   : > { %v1593_v27 = vadd.f32 %v1592_v9, %v1530_v21  ;;  %v2124_v28 = vpack.c.bf16 %v907_v22, %v904_v12  ;;  %v1460_v29 = vadd.f32 %v1459_v19, %v907_v22  ;;  %v1531_v30 = vmul.f32 %v907_v22, %v907_v22 }
 0x12a   : > { %v2204_v31 = vpack.c.bf16 %v2874_v25, %v2870_v17 }
 0x12b   : > { %2268 = vst [vmem:[%s2838_s8 + $0x18] sm:$0xff] %v2124_v28   ;;  %v1594_v32 = vadd.f32 %v1593_v27, %v1531_v30 }
 0x12c   : > { %v911_v33 = vpop.f32.mrb[16].mxu0  ;;  %2284 = vst [vmem:[%s2838_s8 + $0x98] sm:$0xff] %v2204_v31   ;;  %v1039_v34 = vpop.f32.mrb[16].mxu1 }
 0x12d   : > { %v912_v35 = vadd.f32 %v2824_v15, %v911_v33  ;;  %v913_v36 = vpop.f32.mrb[17].mxu0  ;;  %v1041_v37 = vpop.f32.mrb[17].mxu1  ;;  %v2882_v39 = vadd.f32 %v2824_v15, %v1039_v34 }
 0x12e   : > { %v914_v38 = vpop.f32.mrb[18].mxu0  ;;  %v1042_v41 = vpop.f32.mrb[18].mxu1 }
 0x12f   : > { %v1461_v42 = vadd.f32 %v1460_v29, %v912_v35  ;;  %v1532_v43 = vmul.f32 %v912_v35, %v912_v35  ;;  %v915_v44 = vadd.f32 %v2824_v15, %v914_v38  ;;  %v916_v45 = vpop.f32.mrb[19].mxu0  ;;  %v1044_v46 = vpop.f32.mrb[19].mxu1  ;;  %v2886_v48 = vadd.f32 %v2824_v15, %v1042_v41 }
 0x131   : > { %v1595_v49 = vadd.f32 %v1594_v32, %v1532_v43  ;;  %v2129_v50 = vpack.c.bf16 %v915_v44, %v912_v35  ;;  %v1462_v51 = vadd.f32 %v1461_v42, %v915_v44  ;;  %v1533_v52 = vmul.f32 %v915_v44, %v915_v44 }
 0x132   : > { %v2209_v53 = vpack.c.bf16 %v2886_v48, %v2882_v39 }
 0x133   : > { %2269 = vst [vmem:[%s2838_s8 + $0x20] sm:$0xff] %v2129_v50   ;;  %v1596_v54 = vadd.f32 %v1595_v49, %v1533_v52 }
 0x134   : > { %v919_v55 = vpop.f32.mrb[20].mxu0  ;;  %2285 = vst [vmem:[%s2838_s8 + $0xa0] sm:$0xff] %v2209_v53   ;;  %v1047_v56 = vpop.f32.mrb[20].mxu1 }
 0x135   : > { %v920_v57 = vadd.f32 %v2824_v15, %v919_v55  ;;  %v921_v58 = vpop.f32.mrb[21].mxu0  ;;  %v1049_v59 = vpop.f32.mrb[21].mxu1  ;;  %v2894_v62 = vadd.f32 %v2824_v15, %v1047_v56 }
 0x136   : > { %v922_v61 = vpop.f32.mrb[22].mxu0  ;;  %v1050_v63 = vpop.f32.mrb[22].mxu1 }
 0x137   : > { %v1463_v0 = vadd.f32 %v1462_v51, %v920_v57  ;;  %v1534_v1 = vmul.f32 %v920_v57, %v920_v57  ;;  %v923_v2 = vadd.f32 %v2824_v15, %v922_v61  ;;  %v924_v4 = vpop.f32.mrb[23].mxu0  ;;  %v1052_v5 = vpop.f32.mrb[23].mxu1  ;;  %v2898_v6 = vadd.f32 %v2824_v15, %v1050_v63 }
 0x139   : > { %v1597_v7 = vadd.f32 %v1596_v54, %v1534_v1  ;;  %v2134_v8 = vpack.c.bf16 %v923_v2, %v920_v57  ;;  %v1464_v9 = vadd.f32 %v1463_v0, %v923_v2  ;;  %v1535_v10 = vmul.f32 %v923_v2, %v923_v2 }
 0x13a   : > { %v2214_v11 = vpack.c.bf16 %v2898_v6, %v2894_v62 }
 0x13b   : > { %2270 = vst [vmem:[%s2838_s8 + $0x28] sm:$0xff] %v2134_v8   ;;  %v1598_v12 = vadd.f32 %v1597_v7, %v1535_v10 }
 0x13c   : > { %v927_v13 = vpop.f32.mrb[24].mxu0  ;;  %2286 = vst [vmem:[%s2838_s8 + $0xa8] sm:$0xff] %v2214_v11   ;;  %v1055_v14 = vpop.f32.mrb[24].mxu1 }
 0x13d   : > { %v928_v16 = vadd.f32 %v2824_v15, %v927_v13  ;;  %v929_v18 = vpop.f32.mrb[25].mxu0  ;;  %v1057_v19 = vpop.f32.mrb[25].mxu1  ;;  %v2906_v22 = vadd.f32 %v2824_v15, %v1055_v14 }
 0x13e   : > { %v930_v21 = vpop.f32.mrb[26].mxu0  ;;  %v1058_v23 = vpop.f32.mrb[26].mxu1 }
 0x13f   : > { %v1465_v24 = vadd.f32 %v1464_v9, %v928_v16  ;;  %v1536_v27 = vmul.f32 %v928_v16, %v928_v16  ;;  %v931_v28 = vadd.f32 %v2824_v15, %v930_v21  ;;  %v932_v29 = vpop.f32.mrb[27].mxu0  ;;  %v1060_v30 = vpop.f32.mrb[27].mxu1  ;;  %v2910_v31 = vadd.f32 %v2824_v15, %v1058_v23 }
 0x141   : > { %v1599_v32 = vadd.f32 %v1598_v12, %v1536_v27  ;;  %v2139_v33 = vpack.c.bf16 %v931_v28, %v928_v16  ;;  %v1466_v34 = vadd.f32 %v1465_v24, %v931_v28  ;;  %v1537_v35 = vmul.f32 %v931_v28, %v931_v28 }
 0x142   : > { %v2219_v36 = vpack.c.bf16 %v2910_v31, %v2906_v22 }
 0x143   : > { %2271 = vst [vmem:[%s2838_s8 + $0x30] sm:$0xff] %v2139_v33   ;;  %v1600_v37 = vadd.f32 %v1599_v32, %v1537_v35 }
 0x144   : > { %v935_v38 = vpop.f32.mrb[28].mxu0  ;;  %2287 = vst [vmem:[%s2838_s8 + $0xb0] sm:$0xff] %v2219_v36   ;;  %v1063_v41 = vpop.f32.mrb[28].mxu1 }
 0x145   : > { %v936_v42 = vadd.f32 %v2824_v15, %v935_v38  ;;  %v937_v43 = vpop.f32.mrb[29].mxu0  ;;  %v1065_v44 = vpop.f32.mrb[29].mxu1  ;;  %v2918_v46 = vadd.f32 %v2824_v15, %v1063_v41 }
 0x146   : > { %v938_v45 = vpop.f32.mrb[30].mxu0  ;;  %v1066_v49 = vpop.f32.mrb[30].mxu1 }
 0x147   : > { %v1467_v50 = vadd.f32 %v1466_v34, %v936_v42  ;;  %v1538_v51 = vmul.f32 %v936_v42, %v936_v42  ;;  %v939_v52 = vadd.f32 %v2824_v15, %v938_v45  ;;  %v940_v53 = vpop.f32.mrb[31].mxu0  ;;  %v1068_v54 = vpop.f32.mrb[31].mxu1  ;;  %v2922_v55 = vadd.f32 %v2824_v15, %v1066_v49 }
 0x149   : > { %v1601_v56 = vadd.f32 %v1600_v37, %v1538_v51  ;;  %v2144_v57 = vpack.c.bf16 %v939_v52, %v936_v42  ;;  %v1468_v58 = vadd.f32 %v1467_v50, %v939_v52  ;;  %v1539_v59 = vmul.f32 %v939_v52, %v939_v52 }
 0x14a   : > { %v2224_v61 = vpack.c.bf16 %v2922_v55, %v2918_v46 }
 0x14b   : > { %2272 = vst [vmem:[%s2838_s8 + $0x38] sm:$0xff] %v2144_v57   ;;  %v1602_v63 = vadd.f32 %v1601_v56, %v1539_v59 }
 0x14c   : > { %v943_v0 = vpop.f32.mrb[32].mxu0  ;;  %2288 = vst [vmem:[%s2838_s8 + $0xb8] sm:$0xff] %v2224_v61   ;;  %v1071_v1 = vpop.f32.mrb[32].mxu1 }
 0x14d   : > { %v944_v2 = vadd.f32 %v2824_v15, %v943_v0  ;;  %v945_v4 = vpop.f32.mrb[33].mxu0  ;;  %v1073_v5 = vpop.f32.mrb[33].mxu1  ;;  %v2930_v8 = vadd.f32 %v2824_v15, %v1071_v1 }
 0x14e   : > { %v946_v7 = vpop.f32.mrb[34].mxu0  ;;  %v1074_v9 = vpop.f32.mrb[34].mxu1 }
 0x14f   : > { %v1469_v10 = vadd.f32 %v1468_v58, %v944_v2  ;;  %v1540_v11 = vmul.f32 %v944_v2, %v944_v2  ;;  %v947_v12 = vadd.f32 %v2824_v15, %v946_v7  ;;  %v948_v13 = vpop.f32.mrb[35].mxu0  ;;  %v1076_v14 = vpop.f32.mrb[35].mxu1  ;;  %v2934_v16 = vadd.f32 %v2824_v15, %v1074_v9 }
 0x151   : > { %v1603_v18 = vadd.f32 %v1602_v63, %v1540_v11  ;;  %v2149_v19 = vpack.c.bf16 %v947_v12, %v944_v2  ;;  %v1470_v21 = vadd.f32 %v1469_v10, %v947_v12  ;;  %v1541_v23 = vmul.f32 %v947_v12, %v947_v12 }
 0x152   : > { %v2229_v24 = vpack.c.bf16 %v2934_v16, %v2930_v8 }
 0x153   : > { %2273 = vst [vmem:[%s2838_s8 + $0x40] sm:$0xff] %v2149_v19   ;;  %v1604_v27 = vadd.f32 %v1603_v18, %v1541_v23 }
 0x154   : > { %v951_v28 = vpop.f32.mrb[36].mxu0  ;;  %2289 = vst [vmem:[%s2838_s8 + $0xc0] sm:$0xff] %v2229_v24   ;;  %v1079_v29 = vpop.f32.mrb[36].mxu1 }
 0x155   : > { %v952_v30 = vadd.f32 %v2824_v15, %v951_v28  ;;  %v953_v32 = vpop.f32.mrb[37].mxu0  ;;  %v1081_v33 = vpop.f32.mrb[37].mxu1  ;;  %v2942_v35 = vadd.f32 %v2824_v15, %v1079_v29 }
 0x156   : > { %v954_v34 = vpop.f32.mrb[38].mxu0  ;;  %v1082_v36 = vpop.f32.mrb[38].mxu1 }
 0x157   : > { %v1471_v37 = vadd.f32 %v1470_v21, %v952_v30  ;;  %v1542_v38 = vmul.f32 %v952_v30, %v952_v30  ;;  %v955_v41 = vadd.f32 %v2824_v15, %v954_v34  ;;  %v956_v42 = vpop.f32.mrb[39].mxu0  ;;  %v1084_v43 = vpop.f32.mrb[39].mxu1  ;;  %v2946_v44 = vadd.f32 %v2824_v15, %v1082_v36 }
 0x159   : > { %v1605_v45 = vadd.f32 %v1604_v27, %v1542_v38  ;;  %v2154_v49 = vpack.c.bf16 %v955_v41, %v952_v30  ;;  %v1472_v50 = vadd.f32 %v1471_v37, %v955_v41  ;;  %v1543_v51 = vmul.f32 %v955_v41, %v955_v41 }
 0x15a   : > { %v2234_v52 = vpack.c.bf16 %v2946_v44, %v2942_v35 }
 0x15b   : > { %2274 = vst [vmem:[%s2838_s8 + $0x48] sm:$0xff] %v2154_v49   ;;  %v1606_v53 = vadd.f32 %v1605_v45, %v1543_v51 }
 0x15c   : > { %v959_v54 = vpop.f32.mrb[40].mxu0  ;;  %2290 = vst [vmem:[%s2838_s8 + $0xc8] sm:$0xff] %v2234_v52   ;;  %v1087_v56 = vpop.f32.mrb[40].mxu1 }
 0x15d   : > { %v960_v57 = vadd.f32 %v2824_v15, %v959_v54  ;;  %v961_v58 = vpop.f32.mrb[41].mxu0  ;;  %v1089_v59 = vpop.f32.mrb[41].mxu1  ;;  %v2954_v63 = vadd.f32 %v2824_v15, %v1087_v56 }
 0x15e   : > { %v962_v61 = vpop.f32.mrb[42].mxu0  ;;  %v1090_v0 = vpop.f32.mrb[42].mxu1 }
 0x15f   : > { %v1473_v1 = vadd.f32 %v1472_v50, %v960_v57  ;;  %v1544_v2 = vmul.f32 %v960_v57, %v960_v57  ;;  %v963_v4 = vadd.f32 %v2824_v15, %v962_v61  ;;  %v964_v5 = vpop.f32.mrb[43].mxu0  ;;  %v1092_v7 = vpop.f32.mrb[43].mxu1  ;;  %v2958_v9 = vadd.f32 %v2824_v15, %v1090_v0 }
 0x161   : > { %v1607_v10 = vadd.f32 %v1606_v53, %v1544_v2  ;;  %v2159_v11 = vpack.c.bf16 %v963_v4, %v960_v57  ;;  %v1474_v12 = vadd.f32 %v1473_v1, %v963_v4  ;;  %v1545_v13 = vmul.f32 %v963_v4, %v963_v4 }
 0x162   : > { %v2239_v14 = vpack.c.bf16 %v2958_v9, %v2954_v63 }
 0x163   : > { %2275 = vst [vmem:[%s2838_s8 + $0x50] sm:$0xff] %v2159_v11   ;;  %v1608_v18 = vadd.f32 %v1607_v10, %v1545_v13 }
 0x164   : > { %v967_v19 = vpop.f32.mrb[44].mxu0  ;;  %2291 = vst [vmem:[%s2838_s8 + $0xd0] sm:$0xff] %v2239_v14   ;;  %v1095_v21 = vpop.f32.mrb[44].mxu1 }
 0x165   : > { %v968_v23 = vadd.f32 %v2824_v15, %v967_v19  ;;  %v969_v24 = vpop.f32.mrb[45].mxu0  ;;  %v1097_v27 = vpop.f32.mrb[45].mxu1  ;;  %v2966_v29 = vadd.f32 %v2824_v15, %v1095_v21 }
 0x166   : > { %v970_v28 = vpop.f32.mrb[46].mxu0  ;;  %v1098_v30 = vpop.f32.mrb[46].mxu1 }
 0x167   : > { %v1475_v32 = vadd.f32 %v1474_v12, %v968_v23  ;;  %v1546_v33 = vmul.f32 %v968_v23, %v968_v23  ;;  %v971_v34 = vadd.f32 %v2824_v15, %v970_v28  ;;  %v972_v36 = vpop.f32.mrb[47].mxu0  ;;  %v1100_v37 = vpop.f32.mrb[47].mxu1  ;;  %v2970_v38 = vadd.f32 %v2824_v15, %v1098_v30 }
 0x169   : > { %v1609_v41 = vadd.f32 %v1608_v18, %v1546_v33  ;;  %v2164_v42 = vpack.c.bf16 %v971_v34, %v968_v23  ;;  %v1476_v43 = vadd.f32 %v1475_v32, %v971_v34  ;;  %v1547_v45 = vmul.f32 %v971_v34, %v971_v34 }
 0x16a   : > { %v2244_v49 = vpack.c.bf16 %v2970_v38, %v2966_v29 }
 0x16b   : > { %2276 = vst [vmem:[%s2838_s8 + $0x58] sm:$0xff] %v2164_v42   ;;  %v1610_v50 = vadd.f32 %v1609_v41, %v1547_v45 }
 0x16c   : > { %v975_v51 = vpop.f32.mrb[48].mxu0  ;;  %2292 = vst [vmem:[%s2838_s8 + $0xd8] sm:$0xff] %v2244_v49   ;;  %v1103_v52 = vpop.f32.mrb[48].mxu1 }
 0x16d   : > { %v976_v53 = vadd.f32 %v2824_v15, %v975_v51  ;;  %v977_v54 = vpop.f32.mrb[49].mxu0  ;;  %v1105_v56 = vpop.f32.mrb[49].mxu1  ;;  %v2978_v58 = vadd.f32 %v2824_v15, %v1103_v52 }
 0x16e   : > { %v978_v57 = vpop.f32.mrb[50].mxu0  ;;  %v1106_v59 = vpop.f32.mrb[50].mxu1 }
 0x16f   : > { %v1477_v61 = vadd.f32 %v1476_v43, %v976_v53  ;;  %v1548_v0 = vmul.f32 %v976_v53, %v976_v53  ;;  %v979_v1 = vadd.f32 %v2824_v15, %v978_v57  ;;  %v980_v2 = vpop.f32.mrb[51].mxu0  ;;  %v1108_v4 = vpop.f32.mrb[51].mxu1  ;;  %v2982_v5 = vadd.f32 %v2824_v15, %v1106_v59 }
 0x171   : > { %v1611_v7 = vadd.f32 %v1610_v50, %v1548_v0  ;;  %v2169_v10 = vpack.c.bf16 %v979_v1, %v976_v53  ;;  %v1478_v11 = vadd.f32 %v1477_v61, %v979_v1  ;;  %v1549_v12 = vmul.f32 %v979_v1, %v979_v1 }
 0x172   : > { %v2249_v13 = vpack.c.bf16 %v2982_v5, %v2978_v58 }
 0x173   : > { %2277 = vst [vmem:[%s2838_s8 + $0x60] sm:$0xff] %v2169_v10   ;;  %v1612_v14 = vadd.f32 %v1611_v7, %v1549_v12 }
 0x174   : > { %v983_v18 = vpop.f32.mrb[52].mxu0  ;;  %2293 = vst [vmem:[%s2838_s8 + $0xe0] sm:$0xff] %v2249_v13   ;;  %v1111_v19 = vpop.f32.mrb[52].mxu1 }
 0x175   : > { %v984_v21 = vadd.f32 %v2824_v15, %v983_v18  ;;  %v985_v23 = vpop.f32.mrb[53].mxu0  ;;  %v1113_v24 = vpop.f32.mrb[53].mxu1  ;;  %v2990_v28 = vadd.f32 %v2824_v15, %v1111_v19 }
 0x176   : > { %v986_v27 = vpop.f32.mrb[54].mxu0  ;;  %v1114_v30 = vpop.f32.mrb[54].mxu1 }
 0x177   : > { %v1479_v32 = vadd.f32 %v1478_v11, %v984_v21  ;;  %v1550_v33 = vmul.f32 %v984_v21, %v984_v21  ;;  %v987_v34 = vadd.f32 %v2824_v15, %v986_v27  ;;  %v988_v36 = vpop.f32.mrb[55].mxu0  ;;  %v1116_v37 = vpop.f32.mrb[55].mxu1  ;;  %v2994_v41 = vadd.f32 %v2824_v15, %v1114_v30 }
 0x179   : > { %v1613_v42 = vadd.f32 %v1612_v14, %v1550_v33  ;;  %v2174_v43 = vpack.c.bf16 %v987_v34, %v984_v21  ;;  %v1480_v45 = vadd.f32 %v1479_v32, %v987_v34  ;;  %v1551_v49 = vmul.f32 %v987_v34, %v987_v34 }
 0x17a   : > { %v2254_v50 = vpack.c.bf16 %v2994_v41, %v2990_v28 }
 0x17b   : > { %2278 = vst [vmem:[%s2838_s8 + $0x68] sm:$0xff] %v2174_v43   ;;  %v1614_v51 = vadd.f32 %v1613_v42, %v1551_v49 }
 0x17c   : > { %v991_v52 = vpop.f32.mrb[56].mxu0  ;;  %2294 = vst [vmem:[%s2838_s8 + $0xe8] sm:$0xff] %v2254_v50   ;;  %v1119_v53 = vpop.f32.mrb[56].mxu1 }
 0x17d   : > { %v992_v54 = vadd.f32 %v2824_v15, %v991_v52  ;;  %v993_v56 = vpop.f32.mrb[57].mxu0  ;;  %v1121_v57 = vpop.f32.mrb[57].mxu1  ;;  %v3002_v61 = vadd.f32 %v2824_v15, %v1119_v53 }
 0x17e   : > { %v994_v59 = vpop.f32.mrb[58].mxu0  ;;  %v1122_v0 = vpop.f32.mrb[58].mxu1  ;;  %v1556_v57 = vmul.f32 %v2829_v20, %v2829_v20 }
 0x17f   : > { %v1481_v1 = vadd.f32 %v1480_v45, %v992_v54  ;;  %v1552_v2 = vmul.f32 %v992_v54, %v992_v54  ;;  %v995_v4 = vadd.f32 %v2824_v15, %v994_v59  ;;  %v996_v7 = vpop.f32.mrb[59].mxu0  ;;  %v1124_v10 = vpop.f32.mrb[59].mxu1  ;;  %v3006_v11 = vadd.f32 %v2824_v15, %v1122_v0 }
 0x181   : > { %v1615_v12 = vadd.f32 %v1614_v51, %v1552_v2  ;;  %v2179_v13 = vpack.c.bf16 %v995_v4, %v992_v54  ;;  %v1482_v14 = vadd.f32 %v1481_v1, %v995_v4  ;;  %v1553_v18 = vmul.f32 %v995_v4, %v995_v4 }
 0x182   : > { %v2259_v19 = vpack.c.bf16 %v3006_v11, %v3002_v61  ;;  %v1557_v1 = vmul.f32 %v2833_v26, %v2833_v26  ;;  %v1558_v4 = vmul.f32 %v2846_v40, %v2846_v40 }
 0x183   : > { %2279 = vst [vmem:[%s2838_s8 + $0x70] sm:$0xff] %v2179_v13   ;;  %v1616_v21 = vadd.f32 %v1615_v12, %v1553_v18  ;;  %v1559_v12 = vmul.f32 %v2850_v47, %v2850_v47 }
 0x184   : > { %v999_v23 = vpop.f32.mrb[60].mxu0  ;;  %2295 = vst [vmem:[%s2838_s8 + $0xf0] sm:$0xff] %v2259_v19   ;;  %v1127_v24 = vpop.f32.mrb[60].mxu1 }
 0x185   : > { %v1000_v27 = vadd.f32 %v2824_v15, %v999_v23  ;;  %v1001_v30 = vpop.f32.mrb[61].mxu0  ;;  %v1129_v32 = vpop.f32.mrb[61].mxu1  ;;  %v3014_v34 = vadd.f32 %v2824_v15, %v1127_v24 }
 0x186   : > { %v1002_v33 = vpop.f32.mrb[62].mxu0  ;;  %v1130_v36 = vpop.f32.mrb[62].mxu1 }
 0x187   : > { %v1483_v37 = vadd.f32 %v1482_v14, %v1000_v27  ;;  %v1554_v42 = vmul.f32 %v1000_v27, %v1000_v27  ;;  %v1003_v43 = vadd.f32 %v2824_v15, %v1002_v33  ;;  %v1004_v45 = vpop.f32.mrb[63].mxu0  ;;  %v1132_v49 = vpop.f32.mrb[63].mxu1  ;;  %v3018_v50 = vadd.f32 %v2824_v15, %v1130_v36 }
 0x188   : > { %v1560_v14 = vmul.f32 %v2858_v60, %v2858_v60 }
 0x189   : > { %v1617_v51 = vadd.f32 %v1616_v21, %v1554_v42  ;;  %v2184_v52 = vpack.c.bf16 %v1003_v43, %v1000_v27  ;;  %v1484_v53 = vadd.f32 %v1483_v37, %v1003_v43  ;;  %v1555_v54 = vmul.f32 %v1003_v43, %v1003_v43 }
 0x18a   : > { %v2264_v56 = vpack.c.bf16 %v3018_v50, %v3014_v34 }
 0x18b   : > { %2280 = vst [vmem:[%s2838_s8 + $0x78] sm:$0xff] %v2184_v52   ;;  %v1485_v59 = vadd.f32 %v1484_v53, %v2829_v20  ;;  %v1618_v0 = vadd.f32 %v1617_v51, %v1555_v54 }
 0x18c   : > { %2296 = vst [vmem:[%s2838_s8 + $0xf8] sm:$0xff] %v2264_v56   ;;  %s2489_s8 = sshll.u32 %s2599_s7, 4  ;;  %s2490_s8 = int_to_ptr.vmem [resolvable:$false] %s2489_s8 }
 0x18d   : > { %v1486_v15 = vadd.f32 %v1485_v59, %v2833_v26  ;;  %v1619_v2 = vadd.f32 %v1618_v0, %v1556_v57  ;;  %v1561_v26 = vmul.f32 %v2862_v3, %v2862_v3  ;;  %s2491_s15 = scalar_lea.vmem %s2490_s8, 32  ;;  %p2492_p1 = scmp.lt.s32.totalorder %s3133_s11, %s2490_s8 }
 0x18e   : > { %p2493_p2 = scmp.lt.s32.totalorder %s2491_s15, %s2485_s25 }
 0x18f   : > { %v1487_v7 = vadd.f32 %v1486_v15, %v2846_v40  ;;  %v1620_v10 = vadd.f32 %v1619_v2, %v1557_v1  ;;  %v1562_v40 = vmul.f32 %v2870_v17, %v2870_v17  ;;  %v1572_v15 = vmul.f32 %v2930_v8, %v2930_v8 }
 0x190   : > { %p2494_p3 = por %p2493_p2, %p2492_p1 }
 0x191   : > { %v1488_v13 = vadd.f32 %v1487_v7, %v2850_v47  ;;  %v1621_v20 = vadd.f32 %v1620_v10, %v1558_v4  ;;  %v1563_v47 = vmul.f32 %v2874_v25, %v2874_v25  ;;  %v1573_v7 = vmul.f32 %v2934_v16, %v2934_v16 }
 0x192   : > { %p2495_p5 = pnand %p2494_p3, %p2488_p0 }
 0x193   : > { %v1489_v18 = vadd.f32 %v1488_v13, %v2858_v60  ;;  %v1622_v19 = vadd.f32 %v1621_v20, %v1559_v12  ;;  %v1564_v60 = vmul.f32 %v2882_v39, %v2882_v39  ;;  %v1574_v12 = vmul.f32 %v2942_v35, %v2942_v35 }
 0x194   : > { %v1575_v20 = vmul.f32 %v2946_v44, %v2946_v44 }
 0x195   : > { %v1490_v21 = vadd.f32 %v1489_v18, %v2862_v3  ;;  %v1623_v23 = vadd.f32 %v1622_v19, %v1560_v14  ;;  %v1565_v3 = vmul.f32 %v2886_v48, %v2886_v48  ;;  %v1576_v18 = vmul.f32 %v2954_v63, %v2954_v63 }
 0x197   : > { %v1491_v24 = vadd.f32 %v1490_v21, %v2870_v17  ;;  %v1624_v27 = vadd.f32 %v1623_v23, %v1561_v26  ;;  %v1566_v17 = vmul.f32 %v2894_v62, %v2894_v62  ;;  %v1577_v26 = vmul.f32 %v2958_v9, %v2958_v9 }
 0x198   : > { %v1578_v23 = vmul.f32 %v2966_v29, %v2966_v29 }
 0x199   : > { %v1492_v30 = vadd.f32 %v1491_v24, %v2874_v25  ;;  %v1625_v32 = vadd.f32 %v1624_v27, %v1562_v40  ;;  %v1567_v25 = vmul.f32 %v2898_v6, %v2898_v6  ;;  %v1579_v24 = vmul.f32 %v2970_v38, %v2970_v38 }
 0x19b   : > { %v1626_v33 = vadd.f32 %v1625_v32, %v1563_v47  ;;  %v1493_v36 = vadd.f32 %v1492_v30, %v2882_v39  ;;  %v1568_v39 = vmul.f32 %v2906_v22, %v2906_v22  ;;  %v1580_v47 = vmul.f32 %v2978_v58, %v2978_v58 }
 0x19c   : > { %v1581_v32 = vmul.f32 %v2982_v5, %v2982_v5 }
 0x19d   : > { %v1494_v37 = vadd.f32 %v1493_v36, %v2886_v48  ;;  %v1627_v42 = vadd.f32 %v1626_v33, %v1564_v60  ;;  %v1569_v48 = vmul.f32 %v2910_v31, %v2910_v31  ;;  %v1582_v33 = vmul.f32 %v2990_v28, %v2990_v28 }
 0x19f   : > { %v1495_v43 = vadd.f32 %v1494_v37, %v2894_v62  ;;  %v1628_v45 = vadd.f32 %v1627_v42, %v1565_v3  ;;  %v1570_v62 = vmul.f32 %v2918_v46, %v2918_v46  ;;  %v1583_v3 = vmul.f32 %v2994_v41, %v2994_v41 }
 0x1a0   : > { %v1584_v42 = vmul.f32 %v3002_v61, %v3002_v61 }
 0x1a1   : > { %v1496_v49 = vadd.f32 %v1495_v43, %v2898_v6  ;;  %v1629_v51 = vadd.f32 %v1628_v45, %v1566_v17  ;;  %v1571_v6 = vmul.f32 %v2922_v55, %v2922_v55  ;;  %v1585_v43 = vmul.f32 %v3006_v11, %v3006_v11 }
 0x1a3   : > { %v1497_v52 = vadd.f32 %v1496_v49, %v2906_v22  ;;  %v1630_v53 = vadd.f32 %v1629_v51, %v1567_v25  ;;  %v1587_v51 = vmul.f32 %v3018_v50, %v3018_v50 }
 0x1a5   : > { %v1498_v54 = vadd.f32 %v1497_v52, %v2910_v31  ;;  %v1631_v56 = vadd.f32 %v1630_v53, %v1568_v39 }
 0x1a7   : > { %v1499_v57 = vadd.f32 %v1498_v54, %v2918_v46  ;;  %v1632_v59 = vadd.f32 %v1631_v56, %v1569_v48 }
 0x1a9   : > { %v1500_v0 = vadd.f32 %v1499_v57, %v2922_v55  ;;  %v1633_v1 = vadd.f32 %v1632_v59, %v1570_v62 }
 0x1ab   : > { %v1501_v22 = vadd.f32 %v1500_v0, %v2930_v8  ;;  %v1634_v2 = vadd.f32 %v1633_v1, %v1571_v6 }
 0x1ad   : > { %v1635_v31 = vadd.f32 %v1634_v2, %v1572_v15  ;;  %v1502_v4 = vadd.f32 %v1501_v22, %v2934_v16 }
 0x1af   : > { %v1636_v46 = vadd.f32 %v1635_v31, %v1573_v7  ;;  %v1503_v10 = vadd.f32 %v1502_v4, %v2942_v35 }
 0x1b1   : > { %v1637_v55 = vadd.f32 %v1636_v46, %v1574_v12  ;;  %v1504_v13 = vadd.f32 %v1503_v10, %v2946_v44 }
 0x1b3   : > { %v1638_v8 = vadd.f32 %v1637_v55, %v1575_v20  ;;  %v1505_v14 = vadd.f32 %v1504_v13, %v2954_v63 }
 0x1b5   : > { %v1639_v19 = vadd.f32 %v1638_v8, %v1576_v18  ;;  %v1506_v16 = vadd.f32 %v1505_v14, %v2958_v9 }
 0x1b7   : > { %v1640_v21 = vadd.f32 %v1639_v19, %v1577_v26  ;;  %v1507_v35 = vadd.f32 %v1506_v16, %v2966_v29 }
 0x1b9   : > { %v1641_v40 = vadd.f32 %v1640_v21, %v1578_v23  ;;  %v1508_v44 = vadd.f32 %v1507_v35, %v2970_v38 }
 0x1bb   : > { %v1642_v27 = vadd.f32 %v1641_v40, %v1579_v24  ;;  %v1509_v63 = vadd.f32 %v1508_v44, %v2978_v58 }
 0x1bd   : > { %v1643_v30 = vadd.f32 %v1642_v27, %v1580_v47  ;;  %v1510_v9 = vadd.f32 %v1509_v63, %v2982_v5 }
 0x1bf   : > { %v1644_v60 = vadd.f32 %v1643_v30, %v1581_v32  ;;  %v1511_v29 = vadd.f32 %v1510_v9, %v2990_v28  ;;  %v1586_v28 = vmul.f32 %v3014_v34, %v3014_v34 }
 0x1c1   : > { %v1645_v36 = vadd.f32 %v1644_v60, %v1582_v33  ;;  %v1512_v38 = vadd.f32 %v1511_v29, %v2994_v41 }
 0x1c3   : > { %v1646_v58 = vadd.f32 %v1645_v36, %v1583_v3  ;;  %v1513_v37 = vadd.f32 %v1512_v38, %v3002_v61 }
 0x1c5   : > { %v1647_v5 = vadd.f32 %v1646_v58, %v1584_v42  ;;  %v1514_v17 = vadd.f32 %v1513_v37, %v3006_v11 }
 0x1c7   : > { %v1648_v45 = vadd.f32 %v1647_v5, %v1585_v43  ;;  %v1515_v25 = vadd.f32 %v1514_v17, %v3014_v34 }
 0x1c9   : > { %v1649_v41 = vadd.f32 %v1648_v45, %v1586_v28  ;;  %v1516_v49 = vadd.f32 %v1515_v25, %v3018_v50 }
 0x1cb   : > { %v1517_v61 = vrot.slane %v1516_v49, 4  ;;  %v1650_v39 = vadd.f32 %v1649_v41, %v1587_v51 }
 0x1cd   : > { %v1518_v11 = vadd.f32 %v1517_v61, %v1516_v49  ;;  %v1651_v52 = vrot.slane %v1650_v39, 4 }
 0x1cf   : > { %v1519_v53 = vrot.slane %v1518_v11, 2  ;;  %v1652_v48 = vadd.f32 %v1651_v52, %v1650_v39 }
 0x1d1   : > { %v1520_v54 = vadd.f32 %v1519_v53, %v1518_v11  ;;  %v1653_v56 = vrot.slane %v1652_v48, 2 }
 0x1d3   : > { %v1521_v34 = vrot.slane %v1520_v54, 1  ;;  %v1654_v50 = vadd.f32 %v1653_v56, %v1652_v48 }
 0x1d5   : > { %v1522_v62 = vadd.f32 %v1521_v34, %v1520_v54  ;;  %v1655_v57 = vrot.slane %v1654_v50, 1 }
 0x1d7   : > { %1523 = vst [vmem:[%s275_s10] sm:$0x1] %v1522_v62  ;;  %v1656_v59 = vadd.f32 %v1655_v57, %v1654_v50 }
 0x1d8   : > { %2498 = shalt.err (!%p2495_p5)
}
 0x1d9   : > { %s2499_s9 = scalar_lea.hbm %s3131_s17, 16  ;;  %s2503_s21 = scalar_lea.hbm %s3214_s4, 256 }
 0x1da   : > { %p2500_p6 = scmp.ne.s32.totalorder %s3131_s17, %s2499_s9  ;;  %p2504_p10 = scmp.lt.u32.totalorder %s3131_s17, %s3214_s4 }
 0x1db   : > { %p2505_p11 = scmp.lt.u32.totalorder %s2503_s21, %s2499_s9  ;;  %p2507_p13 = scmp.lt.u32.totalorder %s2499_s9, %s3131_s17 }
 0x1dc   : > { %p2501_p7 = pnand %p2500_p6, %p2671_p4 }
 0x1dd   : > { %p2506_p12 = por %p2505_p11, %p2504_p10 }
 0x1de   : > { %p2502_p9 = pneg %p2501_p7 }
 0x1df   : > { %p2508_p0 = por %p2507_p13, %p2506_p12 }
 0x1e1   : > { %p2509_p1 = pnand %p2508_p0, %p2502_p9 }
 0x1e3   : > { %2512 = shalt.err (!%p2509_p1)
}
 0x1e4   : > { %2317 = dma.vmem_to_hbm [thread:$0]  (%p2671_p4), %s3133_s11, 16, %s3131_s17, %s1667_s29   ;;  %1657 = vst [vmem:[%s281_s12] sm:$0x1] %v1656_v59 }
 0x1e5   : > { %s1671_s25 = scalar_lea.sflag [#allocation5], %s3121_s13  ;;  %s2513_s8 = scalar_lea.vmem %s3140_s14, 16 }
 0x1e6   : > { %p2514_p2 = scmp.ne.s32.totalorder %s3140_s14, %s2513_s8  ;;  %s2600_s15 = smov [#allocation4]  }
 0x1e7   : > { %s2517_s9 = sshll.u32 %s2600_s15, 4  ;;  %s2518_s9 = int_to_ptr.vmem [resolvable:$false] %s2517_s9 }
 0x1e8   : > { %p2515_p3 = pnand %p2514_p2, %p2671_p4  ;;  %s2519_s10 = scalar_lea.vmem %s2518_s9, 32 }
 0x1e9   : > { %p2520_p6 = scmp.lt.s32.totalorder %s3140_s14, %s2518_s9  ;;  %p2521_p7 = scmp.lt.s32.totalorder %s2519_s10, %s2513_s8 }
 0x1ea   : > { %p2516_p5 = pneg %p2515_p3 }
 0x1eb   : > { %p2522_p9 = por %p2521_p7, %p2520_p6 }
 0x1ed   : > { %p2523_p10 = pnand %p2522_p9, %p2516_p5 }
 0x1ef   : > { %2526 = shalt.err (!%p2523_p10)
}
 0x1f0   : > { %s2527_s13 = scalar_lea.hbm %s3138_s27, 16  ;;  %s2531_s17 = scalar_lea.hbm %s3215_s5, 256 }
 0x1f1   : > { %p2528_p11 = scmp.ne.s32.totalorder %s3138_s27, %s2527_s13  ;;  %p2532_p0 = scmp.lt.u32.totalorder %s3138_s27, %s3215_s5 }
 0x1f2   : > { %p2533_p1 = scmp.lt.u32.totalorder %s2531_s17, %s2527_s13  ;;  %p2535_p3 = scmp.lt.u32.totalorder %s2527_s13, %s3138_s27 }
 0x1f3   : > { %p2529_p12 = pnand %p2528_p11, %p2671_p4 }
 0x1f4   : > { %p2534_p2 = por %p2533_p1, %p2532_p0 }
 0x1f5   : > { %p2530_p13 = pneg %p2529_p12 }
 0x1f6   : > { %p2536_p5 = por %p2535_p3, %p2534_p2 }
 0x1f8   : > { %p2537_p6 = pnand %p2536_p5, %p2530_p13 }
 0x1fa   : > { %2540 = shalt.err (!%p2537_p6)
}
 0x1fb   : > { %2318 = dma.vmem_to_hbm [thread:$0]  (%p2671_p4), %s3140_s14, 16, %s3138_s27, %s1671_s25  }
 0x1fc PF: > { %p2328_p7 = scmp.ge.s32.totalorder %s2595_s23, 2  ;;  %s1725_s21 = sand.u32 1, %s2575_s18  }
 0x1fd   : > { %s1726_s24 = scalar_lea.sflag [#allocation3], %s1725_s21 }
 0x1fe   : > { %p2322_p9 = pnand %p2328_p7, %p2678_p8 }
 0x200   : > { %2566 = dma.done.wait (!%p2322_p9), %s1726_s24, 16  }
 0x201   : > { %2568 = vsyncadd (!%p2322_p9), %s1726_s24, 4294967280  ;;  %s1734_s7 = scalar_lea.sflag [#allocation5], %s1725_s21 }
 0x202   : > { %2570 = dma.done.wait (!%p2322_p9), %s1734_s7, 16  }
 0x203   : > { %2572 = vsyncadd (!%p2322_p9), %s1734_s7, 4294967280  ;;  %s22_s23 = sadd.s32 1, %s2595_s23   ;;  %s3218_s18 = smov %s2579_s19 }
 0x204   : > { %p19_p10 = scmp.ge.s32.totalorder %s22_s23, 18   ;;  %s3219_s19 = smov %s2583_s20 }
 0x205   : > { %s3220_s20 = smov %s2684_s6  ;;  %s3221_s21 = smov %s2591_s22 }
 0x206   : > { %s3222_s22 = smov %s3224_s26  ;;  %21 = sbr.rel (!%p19_p10) target bundleno = 6 (0x6), region = 102 }
 0x20d   :  { %1738 = vsyncpa [#allocation3], 1 }
 0x20e   :  { %1740 = vsyncpa [#allocation3 + $0x1], 1 }
 0x20f   :  { %1741 = vsyncpa [#allocation5], 1 }
 0x210   :  { %1743 = vsyncpa [#allocation5 + $0x1], 1 }

</bundles_post_ra>
